<compile_context>
chip_gen: v7x
topology: tpu7x:2x2x1
jax: 0.10.0
libtpu: 0.0.40
codegen_flags: <defaults>
</compile_context>

<pallas_src>
import functools

import jax
import jax.numpy as jnp
from jax import lax
from jax.experimental import pallas as pl
from jax.experimental.pallas import tpu as pltpu


def _round_up(x: int, m: int) -> int:
    return ((x + m - 1) // m) * m


def _physical_vmem_bytes() -> int:
    try:
        return int(pltpu.get_tpu_info().vmem_capacity_bytes)
    except Exception:
        return 64 * 1024 * 1024  # conservative: v7x per-TensorCore VMEM


# ----------------------- small-vocab resident-table path ----------------------
# out_tile = onehot(ids) @ table  -- table resident in VMEM across the grid.

def _onehot_embed_kernel(ids_ref, w_ref, out_ref, *, n_vocab: int):
    # ids_ref: VMEM (TB, 1) int32     -- this block's token ids
    # w_ref  : VMEM (V, d_pad)        -- full table, resident across the grid
    # out_ref: VMEM (TB, d_pad)       -- lane-dense output tile
    ids = ids_ref[...]                                            # (TB, 1)
    tb = ids.shape[0]
    vocab_iota = lax.broadcasted_iota(jnp.int32, (tb, n_vocab), 1)
    onehot = (vocab_iota == ids).astype(w_ref.dtype)              # (TB, V) bf16
    # Selection by a one-hot is exact in any accumulator width; the f32
    # accumulator + cast is kept because it is the universally-supported MXU
    # lowering (bf16 accumulation would be equally exact here).
    out_ref[...] = jnp.dot(
        onehot, w_ref[...], preferred_element_type=jnp.float32
    ).astype(out_ref.dtype)


def _embed_resident(ids_flat_padded: jax.Array, weight: jax.Array, *, tb: int):
    n_pad = ids_flat_padded.shape[0]
    n_vocab, d_model = weight.shape
    nb = n_pad // tb
    itemsize = jnp.dtype(weight.dtype).itemsize

    table_bytes = n_vocab * d_model * itemsize
    needed = (table_bytes                       # 1x table (single-buffered)
              + 2 * tb * d_model * itemsize     # output tile, double-buffered
              + 2 * tb * 128 * 4                # lane-padded ids tile
              + tb * n_vocab * 4)               # one-hot temporary
    phys = _physical_vmem_bytes()
    vmem_limit = int(min(max(needed + (16 << 20), 32 << 20), (phys * 7) // 8))

    cost = pl.CostEstimate(
        flops=2 * n_pad * n_vocab * d_model,
        transcendentals=0,
        bytes_accessed=int(n_pad * 4 + table_bytes
                           + n_pad * d_model * itemsize),
    )

    kernel = functools.partial(_onehot_embed_kernel, n_vocab=n_vocab)
    ids2d = ids_flat_padded.reshape(n_pad, 1)

    def build(table_spec):
        return pl.pallas_call(
            kernel,
            out_shape=jax.ShapeDtypeStruct((n_pad, d_model), weight.dtype),
            grid=(nb,),
            in_specs=[
                # Token ids, (TB, 1) so they land sublane-major for the one-hot.
                pl.BlockSpec((tb, 1), lambda i: (i, 0)),
                table_spec,
            ],
            out_specs=pl.BlockSpec((tb, d_model), lambda i: (i, 0)),
            compiler_params=pltpu.CompilerParams(
                # Token blocks are independent -> shard across TensorCores
                # (2x on v7x megacore, harmless on single-TC v5e/v6e).
                dimension_semantics=("parallel",),
                vmem_limit_bytes=vmem_limit,
            ),
            cost_estimate=cost,
        )

    try:
        # Constant index_map -> the table is DMA'd once and stays resident;
        # single-buffer it so the second pipeline buffer isn't wasted VMEM
        # (matters most on v7x's 64 MiB VMEM).
        table_spec = pl.BlockSpec((n_vocab, d_model), lambda i: (0, 0),
                                  pipeline_mode=pl.Buffered(1))
        return build(table_spec)(ids2d, weight)
    except Exception:
        # Conservative fallback if this build rejects single-buffering.
        table_spec = pl.BlockSpec((n_vocab, d_model), lambda i: (0, 0))
        return build(table_spec)(ids2d, weight)


# ------------------ general path: grouped HBM row gather ---------------------
# Table stays in HBM; each grid step gathers `rows_per_step` rows with manual,
# double-buffered row DMAs and writes one lane-dense (rows_per_step, d) tile.

def _gather_rows_kernel(ids_ref, w_hbm, out_ref, buf, sem, *,
                        rows_per_step: int, chunk: int):
    # ids_ref: SMEM (n_pad,) int32 (scalar prefetch)
    # w_hbm  : HBM  (V, d)   (memory_space=pl.ANY)
    # out_ref: VMEM (rows_per_step, d)
    # buf    : VMEM (2, chunk, d)   staging, double-buffered within the step
    # sem    : DMA semaphores (2, chunk)
    step = pl.program_id(0)
    base = step * rows_per_step
    nchunk = rows_per_step // chunk

    def issue(c, slot):
        for g in range(chunk):
            row = ids_ref[base + c * chunk + g]
            pltpu.make_async_copy(w_hbm.at[row], buf.at[slot, g],
                                  sem.at[slot, g]).start()

    issue(0, 0)
    for c in range(nchunk):                      # static unroll
        slot = c & 1
        if c + 1 < nchunk:
            issue(c + 1, 1 - slot)               # keep next chunk's DMAs in flight
        for g in range(chunk):
            pltpu.make_async_copy(w_hbm.at[0], buf.at[slot, g],
                                  sem.at[slot, g]).wait()
        out_ref[c * chunk:(c + 1) * chunk, :] = buf[slot]


def _embed_hbm_gather(ids_flat: jax.Array, weight: jax.Array):
    n_tokens = ids_flat.shape[0]
    n_vocab, d_model = weight.shape
    itemsize = jnp.dtype(weight.dtype).itemsize

    rows_per_step = min(64, _round_up(n_tokens, 8))     # multiple of 8 sublanes
    chunk = 16 if rows_per_step % 16 == 0 else 8
    n_pad = _round_up(n_tokens, rows_per_step)
    if n_pad != n_tokens:
        ids_flat = jnp.pad(ids_flat, (0, n_pad - n_tokens))  # id 0 is valid
    n_steps = n_pad // rows_per_step

    needed = (2 * rows_per_step * d_model * itemsize     # output tiles
              + 2 * chunk * d_model * itemsize)          # staging buffer
    phys = _physical_vmem_bytes()
    vmem_limit = int(min(max(needed + (8 << 20), 32 << 20), (phys * 7) // 8))

    cost = pl.CostEstimate(
        flops=0,
        transcendentals=0,
        bytes_accessed=int(n_pad * 4 + 2 * n_pad * d_model * itemsize),
    )

    kernel = functools.partial(_gather_rows_kernel,
                               rows_per_step=rows_per_step, chunk=chunk)
    # TODO(synk): for extremely long sequences, chunk the scalar-prefetched id
    # array (SMEM 1-D padding) and pad d_model to a multiple of 128 for fully
    # unmasked stores when d_model is not lane-aligned.
    out = pl.pallas_call(
        kernel,
        out_shape=jax.ShapeDtypeStruct((n_pad, d_model), weight.dtype),
        grid_spec=pltpu.PrefetchScalarGridSpec(
            num_scalar_prefetch=1,
            grid=(n_steps,),
            in_specs=[pl.BlockSpec(memory_space=pl.ANY)],   # table stays in HBM
            out_specs=pl.BlockSpec((rows_per_step, d_model),
                                   lambda i, ids: (i, 0)),
            scratch_shapes=[
                pltpu.VMEM((2, chunk, d_model), weight.dtype),
                pltpu.SemaphoreType.DMA((2, chunk)),
            ],
        ),
        compiler_params=pltpu.CompilerParams(
            # Each grid step is self-contained (all DMAs started and waited
            # inside one invocation) -> safe to split across TensorCores.
            dimension_semantics=("parallel",),
            vmem_limit_bytes=vmem_limit,
        ),
        cost_estimate=cost,
    )(ids_flat, weight)
    return out[:n_tokens]


# ----------------------------------- wrapper ----------------------------------

def token_embedding_forward(input_ids: jax.Array, weight: jax.Array) -> jax.Array:
    """Pallas equivalent of nn.Embedding(n_vocab, d_model, padding_idx)(input)."""
    B, S = input_ids.shape
    n_vocab, d_model = weight.shape
    N = B * S
    ids_flat = input_ids.reshape(N).astype(jnp.int32)
    # Single out-of-range convention for both paths: clamp into the table
    # (nn.Embedding would raise; in-range ids are unaffected).
    ids_flat = jnp.clip(ids_flat, 0, n_vocab - 1)

    itemsize = jnp.dtype(weight.dtype).itemsize
    phys = _physical_vmem_bytes()

    # Resident one-hot MXU path only for bf16 and small vocabs: the one-hot
    # matmul does 2*V*d flops to move d*itemsize bytes per token, so the
    # MXU/HBM roofline crossover is ~250 (v5e), ~650 (v6e), ~300 (v7x) for
    # bf16 and 2-4x lower for f32.  256 is a conservative cross-gen cap; f32
    # always takes the exact copy/gather path (also avoids default-precision
    # MXU truncation of f32 values).
    use_onehot = (weight.dtype == jnp.bfloat16) and (n_vocab <= 256)

    if use_onehot:
        d_pad = _round_up(d_model, 128)          # lane-dense output stores
        w = weight if d_pad == d_model else jnp.pad(
            weight, ((0, 0), (0, d_pad - d_model)))
        tb = min(512, _round_up(N, 8))
        n_pad = _round_up(N, tb)
        resident_vmem = (n_vocab * d_pad * itemsize        # 1x table
                         + 2 * tb * d_pad * itemsize       # output tiles
                         + 2 * tb * 128 * 4                # ids tiles
                         + tb * n_vocab * 4                # one-hot temp
                         + (4 << 20))                      # slack
        if resident_vmem <= (phys * 3) // 4:
            ids_p = ids_flat if n_pad == N else jnp.pad(ids_flat, (0, n_pad - N))
            out_flat = _embed_resident(ids_p, w, tb=tb)[:N, :d_model]
            return out_flat.reshape(B, S, d_model)

    # General path: grouped manual-DMA row gather straight from the
    # HBM-resident table (exact for any dtype, dominant path for LLM vocabs).
    out_flat = _embed_hbm_gather(ids_flat, weight)
    return out_flat.reshape(B, S, d_model)


if __name__ == "__main__":
    # args: n_vocab=32, d_model=128, padding_idx=0
    n_vocab, d_model, padding_idx = 32, 128, 0
    B, S = 2, 8

    key = jax.random.PRNGKey(0)
    k_w, k_ids = jax.random.split(key)

    # nn.Embedding init: N(0, 1) with the padding_idx row zeroed.
    weight = jax.random.normal(k_w, (n_vocab, d_model), dtype=jnp.float32)
    weight = weight.at[padding_idx].set(0.0)

    input_ids = jax.random.randint(k_ids, (B, S), 0, n_vocab, dtype=jnp.int32)
    input_ids = input_ids.at[0, 0].set(padding_idx)  # ensure padding id appears

    # f32 weights -> exact grouped HBM row-gather path.
    out_f32 = jax.block_until_ready(token_embedding_forward(input_ids, weight))
    ref_f32 = weight[input_ids]
    assert out_f32.shape == (B, S, d_model)
    assert out_f32.dtype == weight.dtype
    assert jnp.allclose(out_f32, ref_f32), "f32 gather path mismatch"
    assert jnp.all(out_f32[0, 0] == 0.0), "padding_idx row must be zero (f32)"

    # bf16 weights -> resident one-hot MXU path (exact selection).
    weight_bf16 = weight.astype(jnp.bfloat16)
    out_bf16 = jax.block_until_ready(
        token_embedding_forward(input_ids, weight_bf16))
    ref_bf16 = weight_bf16[input_ids]
    assert out_bf16.shape == (B, S, d_model)
    assert out_bf16.dtype == jnp.bfloat16
    assert jnp.array_equal(out_bf16, ref_bf16), "bf16 one-hot path mismatch"
    assert jnp.all(out_bf16[0, 0].astype(jnp.float32) == 0.0), \
        "padding_idx row must be zero (bf16)"

    print("KERNEL_OK")
</pallas_src>

<mosaic_0001>
module attributes {stable_mosaic.version = 11 : i64} {
  func.func @_gather_rows_kernel(%arg0: i32, %arg1: memref<16xi32, #tpu.memory_space<smem>>, %arg2: memref<32x128xf32, #tpu.memory_space<any>>, %arg3: memref<16x128xf32, #tpu.memory_space<vmem>>, %arg4: memref<2x16x128xf32, #tpu.memory_space<vmem>>, %arg5: memref<2x16x!tpu.dma_semaphore, #tpu.memory_space<semaphore_mem>>) attributes {dimension_semantics = [#tpu.dimension_semantics<parallel>], iteration_bounds = array<i64: 1>, scalar_prefetch = 1 : i64, scratch_operands = 2 : i64, tpu.core_type = #tpu.core_type<tc>, window_params = [{}, {transform_indices = @transform_1, window_bounds = array<i64: 16, 128>}]} {
    %c16_i32 = arith.constant 16 : i32
    %0 = arith.muli %arg0, %c16_i32 : i32
    %c0_i32 = arith.constant 0 : i32
    %1 = arith.addi %0, %c0_i32 : i32
    %c0_i32_0 = arith.constant 0 : i32
    %2 = arith.addi %1, %c0_i32_0 : i32
    %3 = arith.index_cast %2 : i32 to index
    %4 = memref.load %arg1[%3] : memref<16xi32, #tpu.memory_space<smem>>
    %c0_i32_1 = arith.constant 0 : i32
    %c0_i32_2 = arith.constant 0 : i32
    %c0_i32_3 = arith.constant 0 : i32
    %c0_i32_4 = arith.constant 0 : i32
    %c0_i32_5 = arith.constant 0 : i32
    %5 = tpu.memref_slice %arg2[%4, %c0_i32_5] : memref<32x128xf32, #tpu.memory_space<any>> -> memref<1x128xf32, #tpu.memory_space<any>>
    %6 = tpu.memref_squeeze %5 : memref<1x128xf32, #tpu.memory_space<any>> -> memref<128xf32, #tpu.memory_space<any>>
    %c0_i32_6 = arith.constant 0 : i32
    %7 = tpu.memref_slice %arg4[%c0_i32_1, %c0_i32_2, %c0_i32_6] : memref<2x16x128xf32, #tpu.memory_space<vmem>> -> memref<1x1x128xf32, #tpu.memory_space<vmem>>
    %8 = tpu.memref_squeeze %7 : memref<1x1x128xf32, #tpu.memory_space<vmem>> -> memref<128xf32, #tpu.memory_space<vmem>>
    %9 = tpu.memref_slice %arg5[%c0_i32_3, %c0_i32_4] : memref<2x16x!tpu.dma_semaphore, #tpu.memory_space<semaphore_mem>> -> memref<1x1x!tpu.dma_semaphore, #tpu.memory_space<semaphore_mem>>
    %10 = tpu.memref_squeeze %9 : memref<1x1x!tpu.dma_semaphore, #tpu.memory_space<semaphore_mem>> -> memref<!tpu.dma_semaphore, #tpu.memory_space<semaphore_mem>>
    tpu.enqueue_dma source(%6 : memref<128xf32, #tpu.memory_space<any>>) target(%8 : memref<128xf32, #tpu.memory_space<vmem>>) target_semaphore(%10 : memref<!tpu.dma_semaphore, #tpu.memory_space<semaphore_mem>>)
    %c0_i32_7 = arith.constant 0 : i32
    %11 = arith.addi %0, %c0_i32_7 : i32
    %c1_i32 = arith.constant 1 : i32
    %12 = arith.addi %11, %c1_i32 : i32
    %13 = arith.index_cast %12 : i32 to index
    %14 = memref.load %arg1[%13] : memref<16xi32, #tpu.memory_space<smem>>
    %c0_i32_8 = arith.constant 0 : i32
    %c1_i32_9 = arith.constant 1 : i32
    %c0_i32_10 = arith.constant 0 : i32
    %c1_i32_11 = arith.constant 1 : i32
    %c0_i32_12 = arith.constant 0 : i32
    %15 = tpu.memref_slice %arg2[%14, %c0_i32_12] : memref<32x128xf32, #tpu.memory_space<any>> -> memref<1x128xf32, #tpu.memory_space<any>>
    %16 = tpu.memref_squeeze %15 : memref<1x128xf32, #tpu.memory_space<any>> -> memref<128xf32, #tpu.memory_space<any>>
    %c0_i32_13 = arith.constant 0 : i32
    %17 = tpu.memref_slice %arg4[%c0_i32_8, %c1_i32_9, %c0_i32_13] : memref<2x16x128xf32, #tpu.memory_space<vmem>> -> memref<1x1x128xf32, #tpu.memory_space<vmem>>
    %18 = tpu.memref_squeeze %17 : memref<1x1x128xf32, #tpu.memory_space<vmem>> -> memref<128xf32, #tpu.memory_space<vmem>>
    %19 = tpu.memref_slice %arg5[%c0_i32_10, %c1_i32_11] : memref<2x16x!tpu.dma_semaphore, #tpu.memory_space<semaphore_mem>> -> memref<1x1x!tpu.dma_semaphore, #tpu.memory_space<semaphore_mem>>
    %20 = tpu.memref_squeeze %19 : memref<1x1x!tpu.dma_semaphore, #tpu.memory_space<semaphore_mem>> -> memref<!tpu.dma_semaphore, #tpu.memory_space<semaphore_mem>>
    tpu.enqueue_dma source(%16 : memref<128xf32, #tpu.memory_space<any>>) target(%18 : memref<128xf32, #tpu.memory_space<vmem>>) target_semaphore(%20 : memref<!tpu.dma_semaphore, #tpu.memory_space<semaphore_mem>>)
    %c0_i32_14 = arith.constant 0 : i32
    %21 = arith.addi %0, %c0_i32_14 : i32
    %c2_i32 = arith.constant 2 : i32
    %22 = arith.addi %21, %c2_i32 : i32
    %23 = arith.index_cast %22 : i32 to index
    %24 = memref.load %arg1[%23] : memref<16xi32, #tpu.memory_space<smem>>
    %c0_i32_15 = arith.constant 0 : i32
    %c2_i32_16 = arith.constant 2 : i32
    %c0_i32_17 = arith.constant 0 : i32
    %c2_i32_18 = arith.constant 2 : i32
    %c0_i32_19 = arith.constant 0 : i32
    %25 = tpu.memref_slice %arg2[%24, %c0_i32_19] : memref<32x128xf32, #tpu.memory_space<any>> -> memref<1x128xf32, #tpu.memory_space<any>>
    %26 = tpu.memref_squeeze %25 : memref<1x128xf32, #tpu.memory_space<any>> -> memref<128xf32, #tpu.memory_space<any>>
    %c0_i32_20 = arith.constant 0 : i32
    %27 = tpu.memref_slice %arg4[%c0_i32_15, %c2_i32_16, %c0_i32_20] : memref<2x16x128xf32, #tpu.memory_space<vmem>> -> memref<1x1x128xf32, #tpu.memory_space<vmem>>
    %28 = tpu.memref_squeeze %27 : memref<1x1x128xf32, #tpu.memory_space<vmem>> -> memref<128xf32, #tpu.memory_space<vmem>>
    %29 = tpu.memref_slice %arg5[%c0_i32_17, %c2_i32_18] : memref<2x16x!tpu.dma_semaphore, #tpu.memory_space<semaphore_mem>> -> memref<1x1x!tpu.dma_semaphore, #tpu.memory_space<semaphore_mem>>
    %30 = tpu.memref_squeeze %29 : memref<1x1x!tpu.dma_semaphore, #tpu.memory_space<semaphore_mem>> -> memref<!tpu.dma_semaphore, #tpu.memory_space<semaphore_mem>>
    tpu.enqueue_dma source(%26 : memref<128xf32, #tpu.memory_space<any>>) target(%28 : memref<128xf32, #tpu.memory_space<vmem>>) target_semaphore(%30 : memref<!tpu.dma_semaphore, #tpu.memory_space<semaphore_mem>>)
    %c0_i32_21 = arith.constant 0 : i32
    %31 = arith.addi %0, %c0_i32_21 : i32
    %c3_i32 = arith.constant 3 : i32
    %32 = arith.addi %31, %c3_i32 : i32
    %33 = arith.index_cast %32 : i32 to index
    %34 = memref.load %arg1[%33] : memref<16xi32, #tpu.memory_space<smem>>
    %c0_i32_22 = arith.constant 0 : i32
    %c3_i32_23 = arith.constant 3 : i32
    %c0_i32_24 = arith.constant 0 : i32
    %c3_i32_25 = arith.constant 3 : i32
    %c0_i32_26 = arith.constant 0 : i32
    %35 = tpu.memref_slice %arg2[%34, %c0_i32_26] : memref<32x128xf32, #tpu.memory_space<any>> -> memref<1x128xf32, #tpu.memory_space<any>>
    %36 = tpu.memref_squeeze %35 : memref<1x128xf32, #tpu.memory_space<any>> -> memref<128xf32, #tpu.memory_space<any>>
    %c0_i32_27 = arith.constant 0 : i32
    %37 = tpu.memref_slice %arg4[%c0_i32_22, %c3_i32_23, %c0_i32_27] : memref<2x16x128xf32, #tpu.memory_space<vmem>> -> memref<1x1x128xf32, #tpu.memory_space<vmem>>
    %38 = tpu.memref_squeeze %37 : memref<1x1x128xf32, #tpu.memory_space<vmem>> -> memref<128xf32, #tpu.memory_space<vmem>>
    %39 = tpu.memref_slice %arg5[%c0_i32_24, %c3_i32_25] : memref<2x16x!tpu.dma_semaphore, #tpu.memory_space<semaphore_mem>> -> memref<1x1x!tpu.dma_semaphore, #tpu.memory_space<semaphore_mem>>
    %40 = tpu.memref_squeeze %39 : memref<1x1x!tpu.dma_semaphore, #tpu.memory_space<semaphore_mem>> -> memref<!tpu.dma_semaphore, #tpu.memory_space<semaphore_mem>>
    tpu.enqueue_dma source(%36 : memref<128xf32, #tpu.memory_space<any>>) target(%38 : memref<128xf32, #tpu.memory_space<vmem>>) target_semaphore(%40 : memref<!tpu.dma_semaphore, #tpu.memory_space<semaphore_mem>>)
    %c0_i32_28 = arith.constant 0 : i32
    %41 = arith.addi %0, %c0_i32_28 : i32
    %c4_i32 = arith.constant 4 : i32
    %42 = arith.addi %41, %c4_i32 : i32
    %43 = arith.index_cast %42 : i32 to index
    %44 = memref.load %arg1[%43] : memref<16xi32, #tpu.memory_space<smem>>
    %c0_i32_29 = arith.constant 0 : i32
    %c4_i32_30 = arith.constant 4 : i32
    %c0_i32_31 = arith.constant 0 : i32
    %c4_i32_32 = arith.constant 4 : i32
    %c0_i32_33 = arith.constant 0 : i32
    %45 = tpu.memref_slice %arg2[%44, %c0_i32_33] : memref<32x128xf32, #tpu.memory_space<any>> -> memref<1x128xf32, #tpu.memory_space<any>>
    %46 = tpu.memref_squeeze %45 : memref<1x128xf32, #tpu.memory_space<any>> -> memref<128xf32, #tpu.memory_space<any>>
    %c0_i32_34 = arith.constant 0 : i32
    %47 = tpu.memref_slice %arg4[%c0_i32_29, %c4_i32_30, %c0_i32_34] : memref<2x16x128xf32, #tpu.memory_space<vmem>> -> memref<1x1x128xf32, #tpu.memory_space<vmem>>
    %48 = tpu.memref_squeeze %47 : memref<1x1x128xf32, #tpu.memory_space<vmem>> -> memref<128xf32, #tpu.memory_space<vmem>>
    %49 = tpu.memref_slice %arg5[%c0_i32_31, %c4_i32_32] : memref<2x16x!tpu.dma_semaphore, #tpu.memory_space<semaphore_mem>> -> memref<1x1x!tpu.dma_semaphore, #tpu.memory_space<semaphore_mem>>
    %50 = tpu.memref_squeeze %49 : memref<1x1x!tpu.dma_semaphore, #tpu.memory_space<semaphore_mem>> -> memref<!tpu.dma_semaphore, #tpu.memory_space<semaphore_mem>>
    tpu.enqueue_dma source(%46 : memref<128xf32, #tpu.memory_space<any>>) target(%48 : memref<128xf32, #tpu.memory_space<vmem>>) target_semaphore(%50 : memref<!tpu.dma_semaphore, #tpu.memory_space<semaphore_mem>>)
    %c0_i32_35 = arith.constant 0 : i32
    %51 = arith.addi %0, %c0_i32_35 : i32
    %c5_i32 = arith.constant 5 : i32
    %52 = arith.addi %51, %c5_i32 : i32
    %53 = arith.index_cast %52 : i32 to index
    %54 = memref.load %arg1[%53] : memref<16xi32, #tpu.memory_space<smem>>
    %c0_i32_36 = arith.constant 0 : i32
    %c5_i32_37 = arith.constant 5 : i32
    %c0_i32_38 = arith.constant 0 : i32
    %c5_i32_39 = arith.constant 5 : i32
    %c0_i32_40 = arith.constant 0 : i32
    %55 = tpu.memref_slice %arg2[%54, %c0_i32_40] : memref<32x128xf32, #tpu.memory_space<any>> -> memref<1x128xf32, #tpu.memory_space<any>>
    %56 = tpu.memref_squeeze %55 : memref<1x128xf32, #tpu.memory_space<any>> -> memref<128xf32, #tpu.memory_space<any>>
    %c0_i32_41 = arith.constant 0 : i32
    %57 = tpu.memref_slice %arg4[%c0_i32_36, %c5_i32_37, %c0_i32_41] : memref<2x16x128xf32, #tpu.memory_space<vmem>> -> memref<1x1x128xf32, #tpu.memory_space<vmem>>
    %58 = tpu.memref_squeeze %57 : memref<1x1x128xf32, #tpu.memory_space<vmem>> -> memref<128xf32, #tpu.memory_space<vmem>>
    %59 = tpu.memref_slice %arg5[%c0_i32_38, %c5_i32_39] : memref<2x16x!tpu.dma_semaphore, #tpu.memory_space<semaphore_mem>> -> memref<1x1x!tpu.dma_semaphore, #tpu.memory_space<semaphore_mem>>
    %60 = tpu.memref_squeeze %59 : memref<1x1x!tpu.dma_semaphore, #tpu.memory_space<semaphore_mem>> -> memref<!tpu.dma_semaphore, #tpu.memory_space<semaphore_mem>>
    tpu.enqueue_dma source(%56 : memref<128xf32, #tpu.memory_space<any>>) target(%58 : memref<128xf32, #tpu.memory_space<vmem>>) target_semaphore(%60 : memref<!tpu.dma_semaphore, #tpu.memory_space<semaphore_mem>>)
    %c0_i32_42 = arith.constant 0 : i32
    %61 = arith.addi %0, %c0_i32_42 : i32
    %c6_i32 = arith.constant 6 : i32
    %62 = arith.addi %61, %c6_i32 : i32
    %63 = arith.index_cast %62 : i32 to index
    %64 = memref.load %arg1[%63] : memref<16xi32, #tpu.memory_space<smem>>
    %c0_i32_43 = arith.constant 0 : i32
    %c6_i32_44 = arith.constant 6 : i32
    %c0_i32_45 = arith.constant 0 : i32
    %c6_i32_46 = arith.constant 6 : i32
    %c0_i32_47 = arith.constant 0 : i32
    %65 = tpu.memref_slice %arg2[%64, %c0_i32_47] : memref<32x128xf32, #tpu.memory_space<any>> -> memref<1x128xf32, #tpu.memory_space<any>>
    %66 = tpu.memref_squeeze %65 : memref<1x128xf32, #tpu.memory_space<any>> -> memref<128xf32, #tpu.memory_space<any>>
    %c0_i32_48 = arith.constant 0 : i32
    %67 = tpu.memref_slice %arg4[%c0_i32_43, %c6_i32_44, %c0_i32_48] : memref<2x16x128xf32, #tpu.memory_space<vmem>> -> memref<1x1x128xf32, #tpu.memory_space<vmem>>
    %68 = tpu.memref_squeeze %67 : memref<1x1x128xf32, #tpu.memory_space<vmem>> -> memref<128xf32, #tpu.memory_space<vmem>>
    %69 = tpu.memref_slice %arg5[%c0_i32_45, %c6_i32_46] : memref<2x16x!tpu.dma_semaphore, #tpu.memory_space<semaphore_mem>> -> memref<1x1x!tpu.dma_semaphore, #tpu.memory_space<semaphore_mem>>
    %70 = tpu.memref_squeeze %69 : memref<1x1x!tpu.dma_semaphore, #tpu.memory_space<semaphore_mem>> -> memref<!tpu.dma_semaphore, #tpu.memory_space<semaphore_mem>>
    tpu.enqueue_dma source(%66 : memref<128xf32, #tpu.memory_space<any>>) target(%68 : memref<128xf32, #tpu.memory_space<vmem>>) target_semaphore(%70 : memref<!tpu.dma_semaphore, #tpu.memory_space<semaphore_mem>>)
    %c0_i32_49 = arith.constant 0 : i32
    %71 = arith.addi %0, %c0_i32_49 : i32
    %c7_i32 = arith.constant 7 : i32
    %72 = arith.addi %71, %c7_i32 : i32
    %73 = arith.index_cast %72 : i32 to index
    %74 = memref.load %arg1[%73] : memref<16xi32, #tpu.memory_space<smem>>
    %c0_i32_50 = arith.constant 0 : i32
    %c7_i32_51 = arith.constant 7 : i32
    %c0_i32_52 = arith.constant 0 : i32
    %c7_i32_53 = arith.constant 7 : i32
    %c0_i32_54 = arith.constant 0 : i32
    %75 = tpu.memref_slice %arg2[%74, %c0_i32_54] : memref<32x128xf32, #tpu.memory_space<any>> -> memref<1x128xf32, #tpu.memory_space<any>>
    %76 = tpu.memref_squeeze %75 : memref<1x128xf32, #tpu.memory_space<any>> -> memref<128xf32, #tpu.memory_space<any>>
    %c0_i32_55 = arith.constant 0 : i32
    %77 = tpu.memref_slice %arg4[%c0_i32_50, %c7_i32_51, %c0_i32_55] : memref<2x16x128xf32, #tpu.memory_space<vmem>> -> memref<1x1x128xf32, #tpu.memory_space<vmem>>
    %78 = tpu.memref_squeeze %77 : memref<1x1x128xf32, #tpu.memory_space<vmem>> -> memref<128xf32, #tpu.memory_space<vmem>>
    %79 = tpu.memref_slice %arg5[%c0_i32_52, %c7_i32_53] : memref<2x16x!tpu.dma_semaphore, #tpu.memory_space<semaphore_mem>> -> memref<1x1x!tpu.dma_semaphore, #tpu.memory_space<semaphore_mem>>
    %80 = tpu.memref_squeeze %79 : memref<1x1x!tpu.dma_semaphore, #tpu.memory_space<semaphore_mem>> -> memref<!tpu.dma_semaphore, #tpu.memory_space<semaphore_mem>>
    tpu.enqueue_dma source(%76 : memref<128xf32, #tpu.memory_space<any>>) target(%78 : memref<128xf32, #tpu.memory_space<vmem>>) target_semaphore(%80 : memref<!tpu.dma_semaphore, #tpu.memory_space<semaphore_mem>>)
    %c0_i32_56 = arith.constant 0 : i32
    %81 = arith.addi %0, %c0_i32_56 : i32
    %c8_i32 = arith.constant 8 : i32
    %82 = arith.addi %81, %c8_i32 : i32
    %83 = arith.index_cast %82 : i32 to index
    %84 = memref.load %arg1[%83] : memref<16xi32, #tpu.memory_space<smem>>
    %c0_i32_57 = arith.constant 0 : i32
    %c8_i32_58 = arith.constant 8 : i32
    %c0_i32_59 = arith.constant 0 : i32
    %c8_i32_60 = arith.constant 8 : i32
    %c0_i32_61 = arith.constant 0 : i32
    %85 = tpu.memref_slice %arg2[%84, %c0_i32_61] : memref<32x128xf32, #tpu.memory_space<any>> -> memref<1x128xf32, #tpu.memory_space<any>>
    %86 = tpu.memref_squeeze %85 : memref<1x128xf32, #tpu.memory_space<any>> -> memref<128xf32, #tpu.memory_space<any>>
    %c0_i32_62 = arith.constant 0 : i32
    %87 = tpu.memref_slice %arg4[%c0_i32_57, %c8_i32_58, %c0_i32_62] : memref<2x16x128xf32, #tpu.memory_space<vmem>> -> memref<1x1x128xf32, #tpu.memory_space<vmem>>
    %88 = tpu.memref_squeeze %87 : memref<1x1x128xf32, #tpu.memory_space<vmem>> -> memref<128xf32, #tpu.memory_space<vmem>>
    %89 = tpu.memref_slice %arg5[%c0_i32_59, %c8_i32_60] : memref<2x16x!tpu.dma_semaphore, #tpu.memory_space<semaphore_mem>> -> memref<1x1x!tpu.dma_semaphore, #tpu.memory_space<semaphore_mem>>
    %90 = tpu.memref_squeeze %89 : memref<1x1x!tpu.dma_semaphore, #tpu.memory_space<semaphore_mem>> -> memref<!tpu.dma_semaphore, #tpu.memory_space<semaphore_mem>>
    tpu.enqueue_dma source(%86 : memref<128xf32, #tpu.memory_space<any>>) target(%88 : memref<128xf32, #tpu.memory_space<vmem>>) target_semaphore(%90 : memref<!tpu.dma_semaphore, #tpu.memory_space<semaphore_mem>>)
    %c0_i32_63 = arith.constant 0 : i32
    %91 = arith.addi %0, %c0_i32_63 : i32
    %c9_i32 = arith.constant 9 : i32
    %92 = arith.addi %91, %c9_i32 : i32
    %93 = arith.index_cast %92 : i32 to index
    %94 = memref.load %arg1[%93] : memref<16xi32, #tpu.memory_space<smem>>
    %c0_i32_64 = arith.constant 0 : i32
    %c9_i32_65 = arith.constant 9 : i32
    %c0_i32_66 = arith.constant 0 : i32
    %c9_i32_67 = arith.constant 9 : i32
    %c0_i32_68 = arith.constant 0 : i32
    %95 = tpu.memref_slice %arg2[%94, %c0_i32_68] : memref<32x128xf32, #tpu.memory_space<any>> -> memref<1x128xf32, #tpu.memory_space<any>>
    %96 = tpu.memref_squeeze %95 : memref<1x128xf32, #tpu.memory_space<any>> -> memref<128xf32, #tpu.memory_space<any>>
    %c0_i32_69 = arith.constant 0 : i32
    %97 = tpu.memref_slice %arg4[%c0_i32_64, %c9_i32_65, %c0_i32_69] : memref<2x16x128xf32, #tpu.memory_space<vmem>> -> memref<1x1x128xf32, #tpu.memory_space<vmem>>
    %98 = tpu.memref_squeeze %97 : memref<1x1x128xf32, #tpu.memory_space<vmem>> -> memref<128xf32, #tpu.memory_space<vmem>>
    %99 = tpu.memref_slice %arg5[%c0_i32_66, %c9_i32_67] : memref<2x16x!tpu.dma_semaphore, #tpu.memory_space<semaphore_mem>> -> memref<1x1x!tpu.dma_semaphore, #tpu.memory_space<semaphore_mem>>
    %100 = tpu.memref_squeeze %99 : memref<1x1x!tpu.dma_semaphore, #tpu.memory_space<semaphore_mem>> -> memref<!tpu.dma_semaphore, #tpu.memory_space<semaphore_mem>>
    tpu.enqueue_dma source(%96 : memref<128xf32, #tpu.memory_space<any>>) target(%98 : memref<128xf32, #tpu.memory_space<vmem>>) target_semaphore(%100 : memref<!tpu.dma_semaphore, #tpu.memory_space<semaphore_mem>>)
    %c0_i32_70 = arith.constant 0 : i32
    %101 = arith.addi %0, %c0_i32_70 : i32
    %c10_i32 = arith.constant 10 : i32
    %102 = arith.addi %101, %c10_i32 : i32
    %103 = arith.index_cast %102 : i32 to index
    %104 = memref.load %arg1[%103] : memref<16xi32, #tpu.memory_space<smem>>
    %c0_i32_71 = arith.constant 0 : i32
    %c10_i32_72 = arith.constant 10 : i32
    %c0_i32_73 = arith.constant 0 : i32
    %c10_i32_74 = arith.constant 10 : i32
    %c0_i32_75 = arith.constant 0 : i32
    %105 = tpu.memref_slice %arg2[%104, %c0_i32_75] : memref<32x128xf32, #tpu.memory_space<any>> -> memref<1x128xf32, #tpu.memory_space<any>>
    %106 = tpu.memref_squeeze %105 : memref<1x128xf32, #tpu.memory_space<any>> -> memref<128xf32, #tpu.memory_space<any>>
    %c0_i32_76 = arith.constant 0 : i32
    %107 = tpu.memref_slice %arg4[%c0_i32_71, %c10_i32_72, %c0_i32_76] : memref<2x16x128xf32, #tpu.memory_space<vmem>> -> memref<1x1x128xf32, #tpu.memory_space<vmem>>
    %108 = tpu.memref_squeeze %107 : memref<1x1x128xf32, #tpu.memory_space<vmem>> -> memref<128xf32, #tpu.memory_space<vmem>>
    %109 = tpu.memref_slice %arg5[%c0_i32_73, %c10_i32_74] : memref<2x16x!tpu.dma_semaphore, #tpu.memory_space<semaphore_mem>> -> memref<1x1x!tpu.dma_semaphore, #tpu.memory_space<semaphore_mem>>
    %110 = tpu.memref_squeeze %109 : memref<1x1x!tpu.dma_semaphore, #tpu.memory_space<semaphore_mem>> -> memref<!tpu.dma_semaphore, #tpu.memory_space<semaphore_mem>>
    tpu.enqueue_dma source(%106 : memref<128xf32, #tpu.memory_space<any>>) target(%108 : memref<128xf32, #tpu.memory_space<vmem>>) target_semaphore(%110 : memref<!tpu.dma_semaphore, #tpu.memory_space<semaphore_mem>>)
    %c0_i32_77 = arith.constant 0 : i32
    %111 = arith.addi %0, %c0_i32_77 : i32
    %c11_i32 = arith.constant 11 : i32
    %112 = arith.addi %111, %c11_i32 : i32
    %113 = arith.index_cast %112 : i32 to index
    %114 = memref.load %arg1[%113] : memref<16xi32, #tpu.memory_space<smem>>
    %c0_i32_78 = arith.constant 0 : i32
    %c11_i32_79 = arith.constant 11 : i32
    %c0_i32_80 = arith.constant 0 : i32
    %c11_i32_81 = arith.constant 11 : i32
    %c0_i32_82 = arith.constant 0 : i32
    %115 = tpu.memref_slice %arg2[%114, %c0_i32_82] : memref<32x128xf32, #tpu.memory_space<any>> -> memref<1x128xf32, #tpu.memory_space<any>>
    %116 = tpu.memref_squeeze %115 : memref<1x128xf32, #tpu.memory_space<any>> -> memref<128xf32, #tpu.memory_space<any>>
    %c0_i32_83 = arith.constant 0 : i32
    %117 = tpu.memref_slice %arg4[%c0_i32_78, %c11_i32_79, %c0_i32_83] : memref<2x16x128xf32, #tpu.memory_space<vmem>> -> memref<1x1x128xf32, #tpu.memory_space<vmem>>
    %118 = tpu.memref_squeeze %117 : memref<1x1x128xf32, #tpu.memory_space<vmem>> -> memref<128xf32, #tpu.memory_space<vmem>>
    %119 = tpu.memref_slice %arg5[%c0_i32_80, %c11_i32_81] : memref<2x16x!tpu.dma_semaphore, #tpu.memory_space<semaphore_mem>> -> memref<1x1x!tpu.dma_semaphore, #tpu.memory_space<semaphore_mem>>
    %120 = tpu.memref_squeeze %119 : memref<1x1x!tpu.dma_semaphore, #tpu.memory_space<semaphore_mem>> -> memref<!tpu.dma_semaphore, #tpu.memory_space<semaphore_mem>>
    tpu.enqueue_dma source(%116 : memref<128xf32, #tpu.memory_space<any>>) target(%118 : memref<128xf32, #tpu.memory_space<vmem>>) target_semaphore(%120 : memref<!tpu.dma_semaphore, #tpu.memory_space<semaphore_mem>>)
    %c0_i32_84 = arith.constant 0 : i32
    %121 = arith.addi %0, %c0_i32_84 : i32
    %c12_i32 = arith.constant 12 : i32
    %122 = arith.addi %121, %c12_i32 : i32
    %123 = arith.index_cast %122 : i32 to index
    %124 = memref.load %arg1[%123] : memref<16xi32, #tpu.memory_space<smem>>
    %c0_i32_85 = arith.constant 0 : i32
    %c12_i32_86 = arith.constant 12 : i32
    %c0_i32_87 = arith.constant 0 : i32
    %c12_i32_88 = arith.constant 12 : i32
    %c0_i32_89 = arith.constant 0 : i32
    %125 = tpu.memref_slice %arg2[%124, %c0_i32_89] : memref<32x128xf32, #tpu.memory_space<any>> -> memref<1x128xf32, #tpu.memory_space<any>>
    %126 = tpu.memref_squeeze %125 : memref<1x128xf32, #tpu.memory_space<any>> -> memref<128xf32, #tpu.memory_space<any>>
    %c0_i32_90 = arith.constant 0 : i32
    %127 = tpu.memref_slice %arg4[%c0_i32_85, %c12_i32_86, %c0_i32_90] : memref<2x16x128xf32, #tpu.memory_space<vmem>> -> memref<1x1x128xf32, #tpu.memory_space<vmem>>
    %128 = tpu.memref_squeeze %127 : memref<1x1x128xf32, #tpu.memory_space<vmem>> -> memref<128xf32, #tpu.memory_space<vmem>>
    %129 = tpu.memref_slice %arg5[%c0_i32_87, %c12_i32_88] : memref<2x16x!tpu.dma_semaphore, #tpu.memory_space<semaphore_mem>> -> memref<1x1x!tpu.dma_semaphore, #tpu.memory_space<semaphore_mem>>
    %130 = tpu.memref_squeeze %129 : memref<1x1x!tpu.dma_semaphore, #tpu.memory_space<semaphore_mem>> -> memref<!tpu.dma_semaphore, #tpu.memory_space<semaphore_mem>>
    tpu.enqueue_dma source(%126 : memref<128xf32, #tpu.memory_space<any>>) target(%128 : memref<128xf32, #tpu.memory_space<vmem>>) target_semaphore(%130 : memref<!tpu.dma_semaphore, #tpu.memory_space<semaphore_mem>>)
    %c0_i32_91 = arith.constant 0 : i32
    %131 = arith.addi %0, %c0_i32_91 : i32
    %c13_i32 = arith.constant 13 : i32
    %132 = arith.addi %131, %c13_i32 : i32
    %133 = arith.index_cast %132 : i32 to index
    %134 = memref.load %arg1[%133] : memref<16xi32, #tpu.memory_space<smem>>
    %c0_i32_92 = arith.constant 0 : i32
    %c13_i32_93 = arith.constant 13 : i32
    %c0_i32_94 = arith.constant 0 : i32
    %c13_i32_95 = arith.constant 13 : i32
    %c0_i32_96 = arith.constant 0 : i32
    %135 = tpu.memref_slice %arg2[%134, %c0_i32_96] : memref<32x128xf32, #tpu.memory_space<any>> -> memref<1x128xf32, #tpu.memory_space<any>>
    %136 = tpu.memref_squeeze %135 : memref<1x128xf32, #tpu.memory_space<any>> -> memref<128xf32, #tpu.memory_space<any>>
    %c0_i32_97 = arith.constant 0 : i32
    %137 = tpu.memref_slice %arg4[%c0_i32_92, %c13_i32_93, %c0_i32_97] : memref<2x16x128xf32, #tpu.memory_space<vmem>> -> memref<1x1x128xf32, #tpu.memory_space<vmem>>
    %138 = tpu.memref_squeeze %137 : memref<1x1x128xf32, #tpu.memory_space<vmem>> -> memref<128xf32, #tpu.memory_space<vmem>>
    %139 = tpu.memref_slice %arg5[%c0_i32_94, %c13_i32_95] : memref<2x16x!tpu.dma_semaphore, #tpu.memory_space<semaphore_mem>> -> memref<1x1x!tpu.dma_semaphore, #tpu.memory_space<semaphore_mem>>
    %140 = tpu.memref_squeeze %139 : memref<1x1x!tpu.dma_semaphore, #tpu.memory_space<semaphore_mem>> -> memref<!tpu.dma_semaphore, #tpu.memory_space<semaphore_mem>>
    tpu.enqueue_dma source(%136 : memref<128xf32, #tpu.memory_space<any>>) target(%138 : memref<128xf32, #tpu.memory_space<vmem>>) target_semaphore(%140 : memref<!tpu.dma_semaphore, #tpu.memory_space<semaphore_mem>>)
    %c0_i32_98 = arith.constant 0 : i32
    %141 = arith.addi %0, %c0_i32_98 : i32
    %c14_i32 = arith.constant 14 : i32
    %142 = arith.addi %141, %c14_i32 : i32
    %143 = arith.index_cast %142 : i32 to index
    %144 = memref.load %arg1[%143] : memref<16xi32, #tpu.memory_space<smem>>
    %c0_i32_99 = arith.constant 0 : i32
    %c14_i32_100 = arith.constant 14 : i32
    %c0_i32_101 = arith.constant 0 : i32
    %c14_i32_102 = arith.constant 14 : i32
    %c0_i32_103 = arith.constant 0 : i32
    %145 = tpu.memref_slice %arg2[%144, %c0_i32_103] : memref<32x128xf32, #tpu.memory_space<any>> -> memref<1x128xf32, #tpu.memory_space<any>>
    %146 = tpu.memref_squeeze %145 : memref<1x128xf32, #tpu.memory_space<any>> -> memref<128xf32, #tpu.memory_space<any>>
    %c0_i32_104 = arith.constant 0 : i32
    %147 = tpu.memref_slice %arg4[%c0_i32_99, %c14_i32_100, %c0_i32_104] : memref<2x16x128xf32, #tpu.memory_space<vmem>> -> memref<1x1x128xf32, #tpu.memory_space<vmem>>
    %148 = tpu.memref_squeeze %147 : memref<1x1x128xf32, #tpu.memory_space<vmem>> -> memref<128xf32, #tpu.memory_space<vmem>>
    %149 = tpu.memref_slice %arg5[%c0_i32_101, %c14_i32_102] : memref<2x16x!tpu.dma_semaphore, #tpu.memory_space<semaphore_mem>> -> memref<1x1x!tpu.dma_semaphore, #tpu.memory_space<semaphore_mem>>
    %150 = tpu.memref_squeeze %149 : memref<1x1x!tpu.dma_semaphore, #tpu.memory_space<semaphore_mem>> -> memref<!tpu.dma_semaphore, #tpu.memory_space<semaphore_mem>>
    tpu.enqueue_dma source(%146 : memref<128xf32, #tpu.memory_space<any>>) target(%148 : memref<128xf32, #tpu.memory_space<vmem>>) target_semaphore(%150 : memref<!tpu.dma_semaphore, #tpu.memory_space<semaphore_mem>>)
    %c0_i32_105 = arith.constant 0 : i32
    %151 = arith.addi %0, %c0_i32_105 : i32
    %c15_i32 = arith.constant 15 : i32
    %152 = arith.addi %151, %c15_i32 : i32
    %153 = arith.index_cast %152 : i32 to index
    %154 = memref.load %arg1[%153] : memref<16xi32, #tpu.memory_space<smem>>
    %c0_i32_106 = arith.constant 0 : i32
    %c15_i32_107 = arith.constant 15 : i32
    %c0_i32_108 = arith.constant 0 : i32
    %c15_i32_109 = arith.constant 15 : i32
    %c0_i32_110 = arith.constant 0 : i32
    %155 = tpu.memref_slice %arg2[%154, %c0_i32_110] : memref<32x128xf32, #tpu.memory_space<any>> -> memref<1x128xf32, #tpu.memory_space<any>>
    %156 = tpu.memref_squeeze %155 : memref<1x128xf32, #tpu.memory_space<any>> -> memref<128xf32, #tpu.memory_space<any>>
    %c0_i32_111 = arith.constant 0 : i32
    %157 = tpu.memref_slice %arg4[%c0_i32_106, %c15_i32_107, %c0_i32_111] : memref<2x16x128xf32, #tpu.memory_space<vmem>> -> memref<1x1x128xf32, #tpu.memory_space<vmem>>
    %158 = tpu.memref_squeeze %157 : memref<1x1x128xf32, #tpu.memory_space<vmem>> -> memref<128xf32, #tpu.memory_space<vmem>>
    %159 = tpu.memref_slice %arg5[%c0_i32_108, %c15_i32_109] : memref<2x16x!tpu.dma_semaphore, #tpu.memory_space<semaphore_mem>> -> memref<1x1x!tpu.dma_semaphore, #tpu.memory_space<semaphore_mem>>
    %160 = tpu.memref_squeeze %159 : memref<1x1x!tpu.dma_semaphore, #tpu.memory_space<semaphore_mem>> -> memref<!tpu.dma_semaphore, #tpu.memory_space<semaphore_mem>>
    tpu.enqueue_dma source(%156 : memref<128xf32, #tpu.memory_space<any>>) target(%158 : memref<128xf32, #tpu.memory_space<vmem>>) target_semaphore(%160 : memref<!tpu.dma_semaphore, #tpu.memory_space<semaphore_mem>>)
    %c0_i32_112 = arith.constant 0 : i32
    %c0_i32_113 = arith.constant 0 : i32
    %c0_i32_114 = arith.constant 0 : i32
    %c0_i32_115 = arith.constant 0 : i32
    %c0_i32_116 = arith.constant 0 : i32
    %c0_i32_117 = arith.constant 0 : i32
    %161 = tpu.memref_slice %arg2[%c0_i32_112, %c0_i32_117] : memref<32x128xf32, #tpu.memory_space<any>> -> memref<1x128xf32, #tpu.memory_space<any>>
    %162 = tpu.memref_squeeze %161 : memref<1x128xf32, #tpu.memory_space<any>> -> memref<128xf32, #tpu.memory_space<any>>
    %c0_i32_118 = arith.constant 0 : i32
    %163 = tpu.memref_slice %arg4[%c0_i32_113, %c0_i32_114, %c0_i32_118] : memref<2x16x128xf32, #tpu.memory_space<vmem>> -> memref<1x1x128xf32, #tpu.memory_space<vmem>>
    %164 = tpu.memref_squeeze %163 : memref<1x1x128xf32, #tpu.memory_space<vmem>> -> memref<128xf32, #tpu.memory_space<vmem>>
    %165 = tpu.memref_slice %arg5[%c0_i32_115, %c0_i32_116] : memref<2x16x!tpu.dma_semaphore, #tpu.memory_space<semaphore_mem>> -> memref<1x1x!tpu.dma_semaphore, #tpu.memory_space<semaphore_mem>>
    %166 = tpu.memref_squeeze %165 : memref<1x1x!tpu.dma_semaphore, #tpu.memory_space<semaphore_mem>> -> memref<!tpu.dma_semaphore, #tpu.memory_space<semaphore_mem>>
    tpu.wait_dma2 semaphore(%166 : memref<!tpu.dma_semaphore, #tpu.memory_space<semaphore_mem>>) src(%162 : memref<128xf32, #tpu.memory_space<any>>) dst(%164 : memref<128xf32, #tpu.memory_space<vmem>>)
    %c0_i32_119 = arith.constant 0 : i32
    %c0_i32_120 = arith.constant 0 : i32
    %c1_i32_121 = arith.constant 1 : i32
    %c0_i32_122 = arith.constant 0 : i32
    %c1_i32_123 = arith.constant 1 : i32
    %c0_i32_124 = arith.constant 0 : i32
    %167 = tpu.memref_slice %arg2[%c0_i32_119, %c0_i32_124] : memref<32x128xf32, #tpu.memory_space<any>> -> memref<1x128xf32, #tpu.memory_space<any>>
    %168 = tpu.memref_squeeze %167 : memref<1x128xf32, #tpu.memory_space<any>> -> memref<128xf32, #tpu.memory_space<any>>
    %c0_i32_125 = arith.constant 0 : i32
    %169 = tpu.memref_slice %arg4[%c0_i32_120, %c1_i32_121, %c0_i32_125] : memref<2x16x128xf32, #tpu.memory_space<vmem>> -> memref<1x1x128xf32, #tpu.memory_space<vmem>>
    %170 = tpu.memref_squeeze %169 : memref<1x1x128xf32, #tpu.memory_space<vmem>> -> memref<128xf32, #tpu.memory_space<vmem>>
    %171 = tpu.memref_slice %arg5[%c0_i32_122, %c1_i32_123] : memref<2x16x!tpu.dma_semaphore, #tpu.memory_space<semaphore_mem>> -> memref<1x1x!tpu.dma_semaphore, #tpu.memory_space<semaphore_mem>>
    %172 = tpu.memref_squeeze %171 : memref<1x1x!tpu.dma_semaphore, #tpu.memory_space<semaphore_mem>> -> memref<!tpu.dma_semaphore, #tpu.memory_space<semaphore_mem>>
    tpu.wait_dma2 semaphore(%172 : memref<!tpu.dma_semaphore, #tpu.memory_space<semaphore_mem>>) src(%168 : memref<128xf32, #tpu.memory_space<any>>) dst(%170 : memref<128xf32, #tpu.memory_space<vmem>>)
    %c0_i32_126 = arith.constant 0 : i32
    %c0_i32_127 = arith.constant 0 : i32
    %c2_i32_128 = arith.constant 2 : i32
    %c0_i32_129 = arith.constant 0 : i32
    %c2_i32_130 = arith.constant 2 : i32
    %c0_i32_131 = arith.constant 0 : i32
    %173 = tpu.memref_slice %arg2[%c0_i32_126, %c0_i32_131] : memref<32x128xf32, #tpu.memory_space<any>> -> memref<1x128xf32, #tpu.memory_space<any>>
    %174 = tpu.memref_squeeze %173 : memref<1x128xf32, #tpu.memory_space<any>> -> memref<128xf32, #tpu.memory_space<any>>
    %c0_i32_132 = arith.constant 0 : i32
    %175 = tpu.memref_slice %arg4[%c0_i32_127, %c2_i32_128, %c0_i32_132] : memref<2x16x128xf32, #tpu.memory_space<vmem>> -> memref<1x1x128xf32, #tpu.memory_space<vmem>>
    %176 = tpu.memref_squeeze %175 : memref<1x1x128xf32, #tpu.memory_space<vmem>> -> memref<128xf32, #tpu.memory_space<vmem>>
    %177 = tpu.memref_slice %arg5[%c0_i32_129, %c2_i32_130] : memref<2x16x!tpu.dma_semaphore, #tpu.memory_space<semaphore_mem>> -> memref<1x1x!tpu.dma_semaphore, #tpu.memory_space<semaphore_mem>>
    %178 = tpu.memref_squeeze %177 : memref<1x1x!tpu.dma_semaphore, #tpu.memory_space<semaphore_mem>> -> memref<!tpu.dma_semaphore, #tpu.memory_space<semaphore_mem>>
    tpu.wait_dma2 semaphore(%178 : memref<!tpu.dma_semaphore, #tpu.memory_space<semaphore_mem>>) src(%174 : memref<128xf32, #tpu.memory_space<any>>) dst(%176 : memref<128xf32, #tpu.memory_space<vmem>>)
    %c0_i32_133 = arith.constant 0 : i32
    %c0_i32_134 = arith.constant 0 : i32
    %c3_i32_135 = arith.constant 3 : i32
    %c0_i32_136 = arith.constant 0 : i32
    %c3_i32_137 = arith.constant 3 : i32
    %c0_i32_138 = arith.constant 0 : i32
    %179 = tpu.memref_slice %arg2[%c0_i32_133, %c0_i32_138] : memref<32x128xf32, #tpu.memory_space<any>> -> memref<1x128xf32, #tpu.memory_space<any>>
    %180 = tpu.memref_squeeze %179 : memref<1x128xf32, #tpu.memory_space<any>> -> memref<128xf32, #tpu.memory_space<any>>
    %c0_i32_139 = arith.constant 0 : i32
    %181 = tpu.memref_slice %arg4[%c0_i32_134, %c3_i32_135, %c0_i32_139] : memref<2x16x128xf32, #tpu.memory_space<vmem>> -> memref<1x1x128xf32, #tpu.memory_space<vmem>>
    %182 = tpu.memref_squeeze %181 : memref<1x1x128xf32, #tpu.memory_space<vmem>> -> memref<128xf32, #tpu.memory_space<vmem>>
    %183 = tpu.memref_slice %arg5[%c0_i32_136, %c3_i32_137] : memref<2x16x!tpu.dma_semaphore, #tpu.memory_space<semaphore_mem>> -> memref<1x1x!tpu.dma_semaphore, #tpu.memory_space<semaphore_mem>>
    %184 = tpu.memref_squeeze %183 : memref<1x1x!tpu.dma_semaphore, #tpu.memory_space<semaphore_mem>> -> memref<!tpu.dma_semaphore, #tpu.memory_space<semaphore_mem>>
    tpu.wait_dma2 semaphore(%184 : memref<!tpu.dma_semaphore, #tpu.memory_space<semaphore_mem>>) src(%180 : memref<128xf32, #tpu.memory_space<any>>) dst(%182 : memref<128xf32, #tpu.memory_space<vmem>>)
    %c0_i32_140 = arith.constant 0 : i32
    %c0_i32_141 = arith.constant 0 : i32
    %c4_i32_142 = arith.constant 4 : i32
    %c0_i32_143 = arith.constant 0 : i32
    %c4_i32_144 = arith.constant 4 : i32
    %c0_i32_145 = arith.constant 0 : i32
    %185 = tpu.memref_slice %arg2[%c0_i32_140, %c0_i32_145] : memref<32x128xf32, #tpu.memory_space<any>> -> memref<1x128xf32, #tpu.memory_space<any>>
    %186 = tpu.memref_squeeze %185 : memref<1x128xf32, #tpu.memory_space<any>> -> memref<128xf32, #tpu.memory_space<any>>
    %c0_i32_146 = arith.constant 0 : i32
    %187 = tpu.memref_slice %arg4[%c0_i32_141, %c4_i32_142, %c0_i32_146] : memref<2x16x128xf32, #tpu.memory_space<vmem>> -> memref<1x1x128xf32, #tpu.memory_space<vmem>>
    %188 = tpu.memref_squeeze %187 : memref<1x1x128xf32, #tpu.memory_space<vmem>> -> memref<128xf32, #tpu.memory_space<vmem>>
    %189 = tpu.memref_slice %arg5[%c0_i32_143, %c4_i32_144] : memref<2x16x!tpu.dma_semaphore, #tpu.memory_space<semaphore_mem>> -> memref<1x1x!tpu.dma_semaphore, #tpu.memory_space<semaphore_mem>>
    %190 = tpu.memref_squeeze %189 : memref<1x1x!tpu.dma_semaphore, #tpu.memory_space<semaphore_mem>> -> memref<!tpu.dma_semaphore, #tpu.memory_space<semaphore_mem>>
    tpu.wait_dma2 semaphore(%190 : memref<!tpu.dma_semaphore, #tpu.memory_space<semaphore_mem>>) src(%186 : memref<128xf32, #tpu.memory_space<any>>) dst(%188 : memref<128xf32, #tpu.memory_space<vmem>>)
    %c0_i32_147 = arith.constant 0 : i32
    %c0_i32_148 = arith.constant 0 : i32
    %c5_i32_149 = arith.constant 5 : i32
    %c0_i32_150 = arith.constant 0 : i32
    %c5_i32_151 = arith.constant 5 : i32
    %c0_i32_152 = arith.constant 0 : i32
    %191 = tpu.memref_slice %arg2[%c0_i32_147, %c0_i32_152] : memref<32x128xf32, #tpu.memory_space<any>> -> memref<1x128xf32, #tpu.memory_space<any>>
    %192 = tpu.memref_squeeze %191 : memref<1x128xf32, #tpu.memory_space<any>> -> memref<128xf32, #tpu.memory_space<any>>
    %c0_i32_153 = arith.constant 0 : i32
    %193 = tpu.memref_slice %arg4[%c0_i32_148, %c5_i32_149, %c0_i32_153] : memref<2x16x128xf32, #tpu.memory_space<vmem>> -> memref<1x1x128xf32, #tpu.memory_space<vmem>>
    %194 = tpu.memref_squeeze %193 : memref<1x1x128xf32, #tpu.memory_space<vmem>> -> memref<128xf32, #tpu.memory_space<vmem>>
    %195 = tpu.memref_slice %arg5[%c0_i32_150, %c5_i32_151] : memref<2x16x!tpu.dma_semaphore, #tpu.memory_space<semaphore_mem>> -> memref<1x1x!tpu.dma_semaphore, #tpu.memory_space<semaphore_mem>>
    %196 = tpu.memref_squeeze %195 : memref<1x1x!tpu.dma_semaphore, #tpu.memory_space<semaphore_mem>> -> memref<!tpu.dma_semaphore, #tpu.memory_space<semaphore_mem>>
    tpu.wait_dma2 semaphore(%196 : memref<!tpu.dma_semaphore, #tpu.memory_space<semaphore_mem>>) src(%192 : memref<128xf32, #tpu.memory_space<any>>) dst(%194 : memref<128xf32, #tpu.memory_space<vmem>>)
    %c0_i32_154 = arith.constant 0 : i32
    %c0_i32_155 = arith.constant 0 : i32
    %c6_i32_156 = arith.constant 6 : i32
    %c0_i32_157 = arith.constant 0 : i32
    %c6_i32_158 = arith.constant 6 : i32
    %c0_i32_159 = arith.constant 0 : i32
    %197 = tpu.memref_slice %arg2[%c0_i32_154, %c0_i32_159] : memref<32x128xf32, #tpu.memory_space<any>> -> memref<1x128xf32, #tpu.memory_space<any>>
    %198 = tpu.memref_squeeze %197 : memref<1x128xf32, #tpu.memory_space<any>> -> memref<128xf32, #tpu.memory_space<any>>
    %c0_i32_160 = arith.constant 0 : i32
    %199 = tpu.memref_slice %arg4[%c0_i32_155, %c6_i32_156, %c0_i32_160] : memref<2x16x128xf32, #tpu.memory_space<vmem>> -> memref<1x1x128xf32, #tpu.memory_space<vmem>>
    %200 = tpu.memref_squeeze %199 : memref<1x1x128xf32, #tpu.memory_space<vmem>> -> memref<128xf32, #tpu.memory_space<vmem>>
    %201 = tpu.memref_slice %arg5[%c0_i32_157, %c6_i32_158] : memref<2x16x!tpu.dma_semaphore, #tpu.memory_space<semaphore_mem>> -> memref<1x1x!tpu.dma_semaphore, #tpu.memory_space<semaphore_mem>>
    %202 = tpu.memref_squeeze %201 : memref<1x1x!tpu.dma_semaphore, #tpu.memory_space<semaphore_mem>> -> memref<!tpu.dma_semaphore, #tpu.memory_space<semaphore_mem>>
    tpu.wait_dma2 semaphore(%202 : memref<!tpu.dma_semaphore, #tpu.memory_space<semaphore_mem>>) src(%198 : memref<128xf32, #tpu.memory_space<any>>) dst(%200 : memref<128xf32, #tpu.memory_space<vmem>>)
    %c0_i32_161 = arith.constant 0 : i32
    %c0_i32_162 = arith.constant 0 : i32
    %c7_i32_163 = arith.constant 7 : i32
    %c0_i32_164 = arith.constant 0 : i32
    %c7_i32_165 = arith.constant 7 : i32
    %c0_i32_166 = arith.constant 0 : i32
    %203 = tpu.memref_slice %arg2[%c0_i32_161, %c0_i32_166] : memref<32x128xf32, #tpu.memory_space<any>> -> memref<1x128xf32, #tpu.memory_space<any>>
    %204 = tpu.memref_squeeze %203 : memref<1x128xf32, #tpu.memory_space<any>> -> memref<128xf32, #tpu.memory_space<any>>
    %c0_i32_167 = arith.constant 0 : i32
    %205 = tpu.memref_slice %arg4[%c0_i32_162, %c7_i32_163, %c0_i32_167] : memref<2x16x128xf32, #tpu.memory_space<vmem>> -> memref<1x1x128xf32, #tpu.memory_space<vmem>>
    %206 = tpu.memref_squeeze %205 : memref<1x1x128xf32, #tpu.memory_space<vmem>> -> memref<128xf32, #tpu.memory_space<vmem>>
    %207 = tpu.memref_slice %arg5[%c0_i32_164, %c7_i32_165] : memref<2x16x!tpu.dma_semaphore, #tpu.memory_space<semaphore_mem>> -> memref<1x1x!tpu.dma_semaphore, #tpu.memory_space<semaphore_mem>>
    %208 = tpu.memref_squeeze %207 : memref<1x1x!tpu.dma_semaphore, #tpu.memory_space<semaphore_mem>> -> memref<!tpu.dma_semaphore, #tpu.memory_space<semaphore_mem>>
    tpu.wait_dma2 semaphore(%208 : memref<!tpu.dma_semaphore, #tpu.memory_space<semaphore_mem>>) src(%204 : memref<128xf32, #tpu.memory_space<any>>) dst(%206 : memref<128xf32, #tpu.memory_space<vmem>>)
    %c0_i32_168 = arith.constant 0 : i32
    %c0_i32_169 = arith.constant 0 : i32
    %c8_i32_170 = arith.constant 8 : i32
    %c0_i32_171 = arith.constant 0 : i32
    %c8_i32_172 = arith.constant 8 : i32
    %c0_i32_173 = arith.constant 0 : i32
    %209 = tpu.memref_slice %arg2[%c0_i32_168, %c0_i32_173] : memref<32x128xf32, #tpu.memory_space<any>> -> memref<1x128xf32, #tpu.memory_space<any>>
    %210 = tpu.memref_squeeze %209 : memref<1x128xf32, #tpu.memory_space<any>> -> memref<128xf32, #tpu.memory_space<any>>
    %c0_i32_174 = arith.constant 0 : i32
    %211 = tpu.memref_slice %arg4[%c0_i32_169, %c8_i32_170, %c0_i32_174] : memref<2x16x128xf32, #tpu.memory_space<vmem>> -> memref<1x1x128xf32, #tpu.memory_space<vmem>>
    %212 = tpu.memref_squeeze %211 : memref<1x1x128xf32, #tpu.memory_space<vmem>> -> memref<128xf32, #tpu.memory_space<vmem>>
    %213 = tpu.memref_slice %arg5[%c0_i32_171, %c8_i32_172] : memref<2x16x!tpu.dma_semaphore, #tpu.memory_space<semaphore_mem>> -> memref<1x1x!tpu.dma_semaphore, #tpu.memory_space<semaphore_mem>>
    %214 = tpu.memref_squeeze %213 : memref<1x1x!tpu.dma_semaphore, #tpu.memory_space<semaphore_mem>> -> memref<!tpu.dma_semaphore, #tpu.memory_space<semaphore_mem>>
    tpu.wait_dma2 semaphore(%214 : memref<!tpu.dma_semaphore, #tpu.memory_space<semaphore_mem>>) src(%210 : memref<128xf32, #tpu.memory_space<any>>) dst(%212 : memref<128xf32, #tpu.memory_space<vmem>>)
    %c0_i32_175 = arith.constant 0 : i32
    %c0_i32_176 = arith.constant 0 : i32
    %c9_i32_177 = arith.constant 9 : i32
    %c0_i32_178 = arith.constant 0 : i32
    %c9_i32_179 = arith.constant 9 : i32
    %c0_i32_180 = arith.constant 0 : i32
    %215 = tpu.memref_slice %arg2[%c0_i32_175, %c0_i32_180] : memref<32x128xf32, #tpu.memory_space<any>> -> memref<1x128xf32, #tpu.memory_space<any>>
    %216 = tpu.memref_squeeze %215 : memref<1x128xf32, #tpu.memory_space<any>> -> memref<128xf32, #tpu.memory_space<any>>
    %c0_i32_181 = arith.constant 0 : i32
    %217 = tpu.memref_slice %arg4[%c0_i32_176, %c9_i32_177, %c0_i32_181] : memref<2x16x128xf32, #tpu.memory_space<vmem>> -> memref<1x1x128xf32, #tpu.memory_space<vmem>>
    %218 = tpu.memref_squeeze %217 : memref<1x1x128xf32, #tpu.memory_space<vmem>> -> memref<128xf32, #tpu.memory_space<vmem>>
    %219 = tpu.memref_slice %arg5[%c0_i32_178, %c9_i32_179] : memref<2x16x!tpu.dma_semaphore, #tpu.memory_space<semaphore_mem>> -> memref<1x1x!tpu.dma_semaphore, #tpu.memory_space<semaphore_mem>>
    %220 = tpu.memref_squeeze %219 : memref<1x1x!tpu.dma_semaphore, #tpu.memory_space<semaphore_mem>> -> memref<!tpu.dma_semaphore, #tpu.memory_space<semaphore_mem>>
    tpu.wait_dma2 semaphore(%220 : memref<!tpu.dma_semaphore, #tpu.memory_space<semaphore_mem>>) src(%216 : memref<128xf32, #tpu.memory_space<any>>) dst(%218 : memref<128xf32, #tpu.memory_space<vmem>>)
    %c0_i32_182 = arith.constant 0 : i32
    %c0_i32_183 = arith.constant 0 : i32
    %c10_i32_184 = arith.constant 10 : i32
    %c0_i32_185 = arith.constant 0 : i32
    %c10_i32_186 = arith.constant 10 : i32
    %c0_i32_187 = arith.constant 0 : i32
    %221 = tpu.memref_slice %arg2[%c0_i32_182, %c0_i32_187] : memref<32x128xf32, #tpu.memory_space<any>> -> memref<1x128xf32, #tpu.memory_space<any>>
    %222 = tpu.memref_squeeze %221 : memref<1x128xf32, #tpu.memory_space<any>> -> memref<128xf32, #tpu.memory_space<any>>
    %c0_i32_188 = arith.constant 0 : i32
    %223 = tpu.memref_slice %arg4[%c0_i32_183, %c10_i32_184, %c0_i32_188] : memref<2x16x128xf32, #tpu.memory_space<vmem>> -> memref<1x1x128xf32, #tpu.memory_space<vmem>>
    %224 = tpu.memref_squeeze %223 : memref<1x1x128xf32, #tpu.memory_space<vmem>> -> memref<128xf32, #tpu.memory_space<vmem>>
    %225 = tpu.memref_slice %arg5[%c0_i32_185, %c10_i32_186] : memref<2x16x!tpu.dma_semaphore, #tpu.memory_space<semaphore_mem>> -> memref<1x1x!tpu.dma_semaphore, #tpu.memory_space<semaphore_mem>>
    %226 = tpu.memref_squeeze %225 : memref<1x1x!tpu.dma_semaphore, #tpu.memory_space<semaphore_mem>> -> memref<!tpu.dma_semaphore, #tpu.memory_space<semaphore_mem>>
    tpu.wait_dma2 semaphore(%226 : memref<!tpu.dma_semaphore, #tpu.memory_space<semaphore_mem>>) src(%222 : memref<128xf32, #tpu.memory_space<any>>) dst(%224 : memref<128xf32, #tpu.memory_space<vmem>>)
    %c0_i32_189 = arith.constant 0 : i32
    %c0_i32_190 = arith.constant 0 : i32
    %c11_i32_191 = arith.constant 11 : i32
    %c0_i32_192 = arith.constant 0 : i32
    %c11_i32_193 = arith.constant 11 : i32
    %c0_i32_194 = arith.constant 0 : i32
    %227 = tpu.memref_slice %arg2[%c0_i32_189, %c0_i32_194] : memref<32x128xf32, #tpu.memory_space<any>> -> memref<1x128xf32, #tpu.memory_space<any>>
    %228 = tpu.memref_squeeze %227 : memref<1x128xf32, #tpu.memory_space<any>> -> memref<128xf32, #tpu.memory_space<any>>
    %c0_i32_195 = arith.constant 0 : i32
    %229 = tpu.memref_slice %arg4[%c0_i32_190, %c11_i32_191, %c0_i32_195] : memref<2x16x128xf32, #tpu.memory_space<vmem>> -> memref<1x1x128xf32, #tpu.memory_space<vmem>>
    %230 = tpu.memref_squeeze %229 : memref<1x1x128xf32, #tpu.memory_space<vmem>> -> memref<128xf32, #tpu.memory_space<vmem>>
    %231 = tpu.memref_slice %arg5[%c0_i32_192, %c11_i32_193] : memref<2x16x!tpu.dma_semaphore, #tpu.memory_space<semaphore_mem>> -> memref<1x1x!tpu.dma_semaphore, #tpu.memory_space<semaphore_mem>>
    %232 = tpu.memref_squeeze %231 : memref<1x1x!tpu.dma_semaphore, #tpu.memory_space<semaphore_mem>> -> memref<!tpu.dma_semaphore, #tpu.memory_space<semaphore_mem>>
    tpu.wait_dma2 semaphore(%232 : memref<!tpu.dma_semaphore, #tpu.memory_space<semaphore_mem>>) src(%228 : memref<128xf32, #tpu.memory_space<any>>) dst(%230 : memref<128xf32, #tpu.memory_space<vmem>>)
    %c0_i32_196 = arith.constant 0 : i32
    %c0_i32_197 = arith.constant 0 : i32
    %c12_i32_198 = arith.constant 12 : i32
    %c0_i32_199 = arith.constant 0 : i32
    %c12_i32_200 = arith.constant 12 : i32
    %c0_i32_201 = arith.constant 0 : i32
    %233 = tpu.memref_slice %arg2[%c0_i32_196, %c0_i32_201] : memref<32x128xf32, #tpu.memory_space<any>> -> memref<1x128xf32, #tpu.memory_space<any>>
    %234 = tpu.memref_squeeze %233 : memref<1x128xf32, #tpu.memory_space<any>> -> memref<128xf32, #tpu.memory_space<any>>
    %c0_i32_202 = arith.constant 0 : i32
    %235 = tpu.memref_slice %arg4[%c0_i32_197, %c12_i32_198, %c0_i32_202] : memref<2x16x128xf32, #tpu.memory_space<vmem>> -> memref<1x1x128xf32, #tpu.memory_space<vmem>>
    %236 = tpu.memref_squeeze %235 : memref<1x1x128xf32, #tpu.memory_space<vmem>> -> memref<128xf32, #tpu.memory_space<vmem>>
    %237 = tpu.memref_slice %arg5[%c0_i32_199, %c12_i32_200] : memref<2x16x!tpu.dma_semaphore, #tpu.memory_space<semaphore_mem>> -> memref<1x1x!tpu.dma_semaphore, #tpu.memory_space<semaphore_mem>>
    %238 = tpu.memref_squeeze %237 : memref<1x1x!tpu.dma_semaphore, #tpu.memory_space<semaphore_mem>> -> memref<!tpu.dma_semaphore, #tpu.memory_space<semaphore_mem>>
    tpu.wait_dma2 semaphore(%238 : memref<!tpu.dma_semaphore, #tpu.memory_space<semaphore_mem>>) src(%234 : memref<128xf32, #tpu.memory_space<any>>) dst(%236 : memref<128xf32, #tpu.memory_space<vmem>>)
    %c0_i32_203 = arith.constant 0 : i32
    %c0_i32_204 = arith.constant 0 : i32
    %c13_i32_205 = arith.constant 13 : i32
    %c0_i32_206 = arith.constant 0 : i32
    %c13_i32_207 = arith.constant 13 : i32
    %c0_i32_208 = arith.constant 0 : i32
    %239 = tpu.memref_slice %arg2[%c0_i32_203, %c0_i32_208] : memref<32x128xf32, #tpu.memory_space<any>> -> memref<1x128xf32, #tpu.memory_space<any>>
    %240 = tpu.memref_squeeze %239 : memref<1x128xf32, #tpu.memory_space<any>> -> memref<128xf32, #tpu.memory_space<any>>
    %c0_i32_209 = arith.constant 0 : i32
    %241 = tpu.memref_slice %arg4[%c0_i32_204, %c13_i32_205, %c0_i32_209] : memref<2x16x128xf32, #tpu.memory_space<vmem>> -> memref<1x1x128xf32, #tpu.memory_space<vmem>>
    %242 = tpu.memref_squeeze %241 : memref<1x1x128xf32, #tpu.memory_space<vmem>> -> memref<128xf32, #tpu.memory_space<vmem>>
    %243 = tpu.memref_slice %arg5[%c0_i32_206, %c13_i32_207] : memref<2x16x!tpu.dma_semaphore, #tpu.memory_space<semaphore_mem>> -> memref<1x1x!tpu.dma_semaphore, #tpu.memory_space<semaphore_mem>>
    %244 = tpu.memref_squeeze %243 : memref<1x1x!tpu.dma_semaphore, #tpu.memory_space<semaphore_mem>> -> memref<!tpu.dma_semaphore, #tpu.memory_space<semaphore_mem>>
    tpu.wait_dma2 semaphore(%244 : memref<!tpu.dma_semaphore, #tpu.memory_space<semaphore_mem>>) src(%240 : memref<128xf32, #tpu.memory_space<any>>) dst(%242 : memref<128xf32, #tpu.memory_space<vmem>>)
    %c0_i32_210 = arith.constant 0 : i32
    %c0_i32_211 = arith.constant 0 : i32
    %c14_i32_212 = arith.constant 14 : i32
    %c0_i32_213 = arith.constant 0 : i32
    %c14_i32_214 = arith.constant 14 : i32
    %c0_i32_215 = arith.constant 0 : i32
    %245 = tpu.memref_slice %arg2[%c0_i32_210, %c0_i32_215] : memref<32x128xf32, #tpu.memory_space<any>> -> memref<1x128xf32, #tpu.memory_space<any>>
    %246 = tpu.memref_squeeze %245 : memref<1x128xf32, #tpu.memory_space<any>> -> memref<128xf32, #tpu.memory_space<any>>
    %c0_i32_216 = arith.constant 0 : i32
    %247 = tpu.memref_slice %arg4[%c0_i32_211, %c14_i32_212, %c0_i32_216] : memref<2x16x128xf32, #tpu.memory_space<vmem>> -> memref<1x1x128xf32, #tpu.memory_space<vmem>>
    %248 = tpu.memref_squeeze %247 : memref<1x1x128xf32, #tpu.memory_space<vmem>> -> memref<128xf32, #tpu.memory_space<vmem>>
    %249 = tpu.memref_slice %arg5[%c0_i32_213, %c14_i32_214] : memref<2x16x!tpu.dma_semaphore, #tpu.memory_space<semaphore_mem>> -> memref<1x1x!tpu.dma_semaphore, #tpu.memory_space<semaphore_mem>>
    %250 = tpu.memref_squeeze %249 : memref<1x1x!tpu.dma_semaphore, #tpu.memory_space<semaphore_mem>> -> memref<!tpu.dma_semaphore, #tpu.memory_space<semaphore_mem>>
    tpu.wait_dma2 semaphore(%250 : memref<!tpu.dma_semaphore, #tpu.memory_space<semaphore_mem>>) src(%246 : memref<128xf32, #tpu.memory_space<any>>) dst(%248 : memref<128xf32, #tpu.memory_space<vmem>>)
    %c0_i32_217 = arith.constant 0 : i32
    %c0_i32_218 = arith.constant 0 : i32
    %c15_i32_219 = arith.constant 15 : i32
    %c0_i32_220 = arith.constant 0 : i32
    %c15_i32_221 = arith.constant 15 : i32
    %c0_i32_222 = arith.constant 0 : i32
    %251 = tpu.memref_slice %arg2[%c0_i32_217, %c0_i32_222] : memref<32x128xf32, #tpu.memory_space<any>> -> memref<1x128xf32, #tpu.memory_space<any>>
    %252 = tpu.memref_squeeze %251 : memref<1x128xf32, #tpu.memory_space<any>> -> memref<128xf32, #tpu.memory_space<any>>
    %c0_i32_223 = arith.constant 0 : i32
    %253 = tpu.memref_slice %arg4[%c0_i32_218, %c15_i32_219, %c0_i32_223] : memref<2x16x128xf32, #tpu.memory_space<vmem>> -> memref<1x1x128xf32, #tpu.memory_space<vmem>>
    %254 = tpu.memref_squeeze %253 : memref<1x1x128xf32, #tpu.memory_space<vmem>> -> memref<128xf32, #tpu.memory_space<vmem>>
    %255 = tpu.memref_slice %arg5[%c0_i32_220, %c15_i32_221] : memref<2x16x!tpu.dma_semaphore, #tpu.memory_space<semaphore_mem>> -> memref<1x1x!tpu.dma_semaphore, #tpu.memory_space<semaphore_mem>>
    %256 = tpu.memref_squeeze %255 : memref<1x1x!tpu.dma_semaphore, #tpu.memory_space<semaphore_mem>> -> memref<!tpu.dma_semaphore, #tpu.memory_space<semaphore_mem>>
    tpu.wait_dma2 semaphore(%256 : memref<!tpu.dma_semaphore, #tpu.memory_space<semaphore_mem>>) src(%252 : memref<128xf32, #tpu.memory_space<any>>) dst(%254 : memref<128xf32, #tpu.memory_space<vmem>>)
    %c0 = arith.constant 0 : index
    %c0_224 = arith.constant 0 : index
    %c0_225 = arith.constant 0 : index
    %257 = vector.load %arg4[%c0, %c0_224, %c0_225] : memref<2x16x128xf32, #tpu.memory_space<vmem>>, vector<1x16x128xf32>
    %258 = vector.shape_cast %257 : vector<1x16x128xf32> to vector<16x128xf32>
    %c0_226 = arith.constant 0 : index
    %c0_227 = arith.constant 0 : index
    %259 = vector.load %arg3[%c0_226, %c0_227] : memref<16x128xf32, #tpu.memory_space<vmem>>, vector<16x128xf32>
    tpu.vector_store %arg3[%c0_226, %c0_227], %258 {strides = array<i32>} : memref<16x128xf32, #tpu.memory_space<vmem>>, vector<16x128xf32>,
    return
  }
  func.func @transform_1(%arg0: i32, %arg1: memref<16xi32, #tpu.memory_space<smem>>) -> (i32, i32) {
    %c0_i32 = arith.constant 0 : i32
    %c0_i32_0 = arith.constant 0 : i32
    return %arg0, %c0_i32 : i32, i32
  }
}

</mosaic_0001>

<bundles_post_ra>
// kernel: tpu_custom_call.1
= control target key start
LH: loop header
LB: loop body
LE: loop exit
PB: predicated region body
PF: predicated region fallthrough
CT: control target
= control target key end

     0   :  { %s1446_s0 = inlined_call_operand.hbm [shape: s32[16], index: 0, kind: input, shape index: {}]   ;;  %s1447_s1 = inlined_call_operand.hbm [shape: f32[32,128], index: 1, kind: input, shape index: {}]   ;;  %s1448_s2 = inlined_call_operand.hbm [shape: f32[16,128], index: 2, kind: output, shape index: {}]  }
   0x1   :  { %s672_s11 = scalar_lea.hbm %s1446_s0, 16 }
   0x2   :  { %p673_p0 = scmp.ne.s32.totalorder %s1446_s0, %s672_s11  ;;  %p676_p1 = scmp.lt.u32.totalorder %s672_s11, %s1446_s0 }
   0x4   :  { %p678_p2 = pnand %p676_p1, %p673_p0 }
   0x6   :  { %681 = shalt.err (!%p678_p2)  }
   0x7   :  { %s1124_s16 = smov [#allocation5]  }
   0x8   :  { %8 = dma.hbm_to_smem %s1446_s0, 16, %s1124_s16, [#allocation4] }
   0x9   :  { %1088 = dma.done.wait [#allocation4], 16 }
   0xa   :  { %1089 = vsyncadd [#allocation4], 4294967280 }
   0xb   :  { %10 = sfence }
   0xc   :  { %11 = vsyncpa [#allocation7], 0  ;;  %s13_s19 = sld [smem:[#allocation5]]  ;;  %s1125_s20 = smov [#allocation2]  }
   0xd   :  { %s23_s21 = sshll.u32 %s1125_s20, 4  ;;  %s1171_s22 = sld [smem:[#allocation5 + $0x1]]  ;;  %s1173_s21 = int_to_ptr.vmem [resolvable:$true] %s23_s21 }
   0xe   :  { %s1126_s23 = smov [#allocation2 + $0x1]   ;;  %s1175_s25 = sld [smem:[#allocation5 + $0x2]] }
   0xf   :  { %s40_s24 = sshll.u32 %s1126_s23, 4  ;;  %s1127_s26 = smov [#allocation2 + $0x2]   ;;  %s1177_s24 = int_to_ptr.vmem [resolvable:$true] %s40_s24 }
  0x10   :  { %s57_s0 = sshll.u32 %s1127_s26, 4  ;;  %s1179_s27 = sld [smem:[#allocation5 + $0x3]]  ;;  %s1181_s0 = int_to_ptr.vmem [resolvable:$true] %s57_s0 }
  0x11   :  { %s1190_s8 = scalar_lea.hbm %s1447_s1, 512 }
  0x12   :  { %s589_s28 = sshll.u32 %s13_s19, 4 }
  0x13   :  { %s15_s3 = scalar_lea.hbm %s1447_s1, %s589_s28  ;;  %s591_s4 = sshll.u32 %s1171_s22, 4 }
  0x14   :  { %s682_s5 = scalar_lea.hbm %s15_s3, 16  ;;  %p685_p4 = scmp.lt.u32.totalorder %s15_s3, %s1447_s1 }
  0x15   :  { %p683_p3 = scmp.ne.s32.totalorder %s15_s3, %s682_s5  ;;  %p686_p5 = scmp.lt.u32.totalorder %s1190_s8, %s682_s5 }
  0x16   :  { %p688_p7 = scmp.lt.u32.totalorder %s682_s5, %s15_s3 }
  0x17   :  { %p687_p6 = por %p686_p5, %p685_p4 }
  0x19   :  { %p689_p8 = por %p688_p7, %p687_p6 }
  0x1b   :  { %p690_p9 = pnand %p689_p8, %p683_p3 }
  0x1d   :  { %693 = shalt.err (!%p690_p9)  }
  0x1e   :  { %s694_s11 = scalar_lea.vmem %s1173_s21, 16  ;;  %s1199_s12 = scalar_lea.vmem %s1173_s21, 512 }
  0x1f   :  { %p695_p10 = scmp.ne.s32.totalorder %s1173_s21, %s694_s11  ;;  %p699_p11 = scmp.lt.s32.totalorder %s1173_s21, %s1173_s21 }
  0x20   :  { %p700_p12 = scmp.lt.s32.totalorder %s1199_s12, %s694_s11 }
  0x22   :  { %p701_p13 = por %p700_p12, %p699_p11 }
  0x24   :  { %p702_p0 = pnand %p701_p13, %p695_p10 }
  0x26   :  { %705 = shalt.err (!%p702_p0)  }
  0x27   :  { %26 = dma.hbm_to_vmem [thread:$0]  %s15_s3, 16, %s1173_s21, [#allocation3] }
  0x28   :  { %s30_s15 = scalar_lea.hbm %s1447_s1, %s591_s4  ;;  %s593_s16 = sshll.u32 %s1175_s25, 4 }
  0x29   :  { %s706_s17 = scalar_lea.hbm %s30_s15, 16  ;;  %p709_p2 = scmp.lt.u32.totalorder %s30_s15, %s1447_s1 }
  0x2a   :  { %p707_p1 = scmp.ne.s32.totalorder %s30_s15, %s706_s17  ;;  %p710_p3 = scmp.lt.u32.totalorder %s1190_s8, %s706_s17 }
  0x2b   :  { %p712_p5 = scmp.lt.u32.totalorder %s706_s17, %s30_s15 }
  0x2c   :  { %p711_p4 = por %p710_p3, %p709_p2 }
  0x2e   :  { %p713_p6 = por %p712_p5, %p711_p4 }
  0x30   :  { %p714_p7 = pnand %p713_p6, %p707_p1 }
  0x32   :  { %717 = shalt.err (!%p714_p7)  }
  0x33   :  { %s718_s20 = scalar_lea.vmem %s1177_s24, 16  ;;  %p723_p9 = scmp.lt.s32.totalorder %s1177_s24, %s1173_s21 }
  0x34   :  { %p719_p8 = scmp.ne.s32.totalorder %s1177_s24, %s718_s20  ;;  %p724_p10 = scmp.lt.s32.totalorder %s1199_s12, %s718_s20 }
  0x36   :  { %p725_p11 = por %p724_p10, %p723_p9 }
  0x38   :  { %p726_p12 = pnand %p725_p11, %p719_p8 }
  0x3a   :  { %729 = shalt.err (!%p726_p12)  }
  0x3b   :  { %43 = dma.hbm_to_vmem [thread:$0]  %s30_s15, 16, %s1177_s24, [#allocation3 + $0x1] }
  0x3c   :  { %s47_s25 = scalar_lea.hbm %s1447_s1, %s593_s16  ;;  %s595_s26 = sshll.u32 %s1179_s27, 4 }
  0x3d   :  { %s730_s28 = scalar_lea.hbm %s47_s25, 16  ;;  %p733_p0 = scmp.lt.u32.totalorder %s47_s25, %s1447_s1 }
  0x3e   :  { %p731_p13 = scmp.ne.s32.totalorder %s47_s25, %s730_s28  ;;  %p734_p1 = scmp.lt.u32.totalorder %s1190_s8, %s730_s28 }
  0x3f   :  { %p736_p3 = scmp.lt.u32.totalorder %s730_s28, %s47_s25 }
  0x40   :  { %p735_p2 = por %p734_p1, %p733_p0 }
  0x42   :  { %p737_p4 = por %p736_p3, %p735_p2 }
  0x44   :  { %p738_p5 = pnand %p737_p4, %p731_p13 }
  0x46   :  { %741 = shalt.err (!%p738_p5)  }
  0x47   :  { %s742_s24 = scalar_lea.vmem %s1181_s0, 16  ;;  %p747_p7 = scmp.lt.s32.totalorder %s1181_s0, %s1173_s21 }
  0x48   :  { %p743_p6 = scmp.ne.s32.totalorder %s1181_s0, %s742_s24  ;;  %p748_p8 = scmp.lt.s32.totalorder %s1199_s12, %s742_s24 }
  0x4a   :  { %p749_p9 = por %p748_p8, %p747_p7 }
  0x4c   :  { %p750_p10 = pnand %p749_p9, %p743_p6 }
  0x4e   :  { %753 = shalt.err (!%p750_p10)  }
  0x4f   :  { %60 = dma.hbm_to_vmem [thread:$0]  %s47_s25, 16, %s1181_s0, [#allocation3 + $0x2] }
  0x50   :  { %s64_s4 = scalar_lea.hbm %s1447_s1, %s595_s26  ;;  %s1128_s5 = smov [#allocation2 + $0x3]  }
  0x51   :  { %s74_s6 = sshll.u32 %s1128_s5, 4  ;;  %s1236_s7 = sld [smem:[#allocation5 + $0x4]]  ;;  %s75_s6 = int_to_ptr.vmem [resolvable:$true] %s74_s6 }
  0x52   :  { %s754_s9 = scalar_lea.hbm %s64_s4, 16  ;;  %p757_p12 = scmp.lt.u32.totalorder %s64_s4, %s1447_s1 }
  0x53   :  { %p755_p11 = scmp.ne.s32.totalorder %s64_s4, %s754_s9  ;;  %p758_p13 = scmp.lt.u32.totalorder %s1190_s8, %s754_s9 }
  0x54   :  { %p760_p1 = scmp.lt.u32.totalorder %s754_s9, %s64_s4 }
  0x55   :  { %p759_p0 = por %p758_p13, %p757_p12 }
  0x57   :  { %p761_p2 = por %p760_p1, %p759_p0 }
  0x59   :  { %p762_p3 = pnand %p761_p2, %p755_p11 }
  0x5b   :  { %765 = shalt.err (!%p762_p3)  }
  0x5c   :  { %s766_s0 = scalar_lea.vmem %s75_s6, 16  ;;  %p771_p5 = scmp.lt.s32.totalorder %s75_s6, %s1173_s21 }
  0x5d   :  { %p767_p4 = scmp.ne.s32.totalorder %s75_s6, %s766_s0  ;;  %p772_p6 = scmp.lt.s32.totalorder %s1199_s12, %s766_s0 }
  0x5f   :  { %p773_p7 = por %p772_p6, %p771_p5 }
  0x61   :  { %p774_p8 = pnand %p773_p7, %p767_p4 }
  0x63   :  { %777 = shalt.err (!%p774_p8)  }
  0x64   :  { %77 = dma.hbm_to_vmem [thread:$0]  %s64_s4, 16, %s75_s6, [#allocation3 + $0x3] }
  0x65   :  { %s1129_s13 = smov [#allocation2 + $0x4]   ;;  %s1244_s15 = sld [smem:[#allocation5 + $0x5]] }
  0x66   :  { %s91_s14 = sshll.u32 %s1129_s13, 4  ;;  %s1130_s16 = smov [#allocation2 + $0x5]   ;;  %s92_s14 = int_to_ptr.vmem [resolvable:$true] %s91_s14 }
  0x67   :  { %s108_s17 = sshll.u32 %s1130_s16, 4  ;;  %s1246_s18 = sld [smem:[#allocation5 + $0x6]]  ;;  %s1249_s17 = int_to_ptr.vmem [resolvable:$true] %s108_s17 }
  0x68   :  { %s597_s19 = sshll.u32 %s1236_s7, 4 }
  0x69   :  { %s81_s23 = scalar_lea.hbm %s1447_s1, %s597_s19 }
  0x6a   :  { %s778_s25 = scalar_lea.hbm %s81_s23, 16  ;;  %p781_p10 = scmp.lt.u32.totalorder %s81_s23, %s1447_s1 }
  0x6b   :  { %p779_p9 = scmp.ne.s32.totalorder %s81_s23, %s778_s25  ;;  %p782_p11 = scmp.lt.u32.totalorder %s1190_s8, %s778_s25 }
  0x6c   :  { %p784_p13 = scmp.lt.u32.totalorder %s778_s25, %s81_s23 }
  0x6d   :  { %p783_p12 = por %p782_p11, %p781_p10 }
  0x6f   :  { %p785_p0 = por %p784_p13, %p783_p12 }
  0x71   :  { %p786_p1 = pnand %p785_p0, %p779_p9 }
  0x73   :  { %789 = shalt.err (!%p786_p1)  }
  0x74   :  { %s790_s29 = scalar_lea.vmem %s92_s14, 16  ;;  %p795_p3 = scmp.lt.s32.totalorder %s92_s14, %s1173_s21 }
  0x75   :  { %p791_p2 = scmp.ne.s32.totalorder %s92_s14, %s790_s29  ;;  %p796_p4 = scmp.lt.s32.totalorder %s1199_s12, %s790_s29 }
  0x77   :  { %p797_p5 = por %p796_p4, %p795_p3 }
  0x79   :  { %p798_p6 = pnand %p797_p5, %p791_p2 }
  0x7b   :  { %801 = shalt.err (!%p798_p6)  }
  0x7c   :  { %94 = dma.hbm_to_vmem [thread:$0]  %s81_s23, 16, %s92_s14, [#allocation3 + $0x4] }
  0x7d   :  { %s599_s30 = sshll.u32 %s1244_s15, 4  ;;  %s1131_s24 = smov [#allocation2 + $0x6]  }
  0x7e   :  { %s125_s27 = sshll.u32 %s1131_s24, 4  ;;  %s98_s5 = scalar_lea.hbm %s1447_s1, %s599_s30  ;;  %s1264_s27 = int_to_ptr.vmem [resolvable:$true] %s125_s27 }
  0x7f   :  { %s802_s6 = scalar_lea.hbm %s98_s5, 16  ;;  %p805_p8 = scmp.lt.u32.totalorder %s98_s5, %s1447_s1 }
  0x80   :  { %p803_p7 = scmp.ne.s32.totalorder %s98_s5, %s802_s6  ;;  %p806_p9 = scmp.lt.u32.totalorder %s1190_s8, %s802_s6 }
  0x81   :  { %p808_p11 = scmp.lt.u32.totalorder %s802_s6, %s98_s5 }
  0x82   :  { %p807_p10 = por %p806_p9, %p805_p8 }
  0x84   :  { %p809_p12 = por %p808_p11, %p807_p10 }
  0x86   :  { %p810_p13 = pnand %p809_p12, %p803_p7 }
  0x88   :  { %813 = shalt.err (!%p810_p13)  }
  0x89   :  { %s814_s10 = scalar_lea.vmem %s1249_s17, 16  ;;  %p819_p1 = scmp.lt.s32.totalorder %s1249_s17, %s1173_s21 }
  0x8a   :  { %p815_p0 = scmp.ne.s32.totalorder %s1249_s17, %s814_s10  ;;  %p820_p2 = scmp.lt.s32.totalorder %s1199_s12, %s814_s10 }
  0x8c   :  { %p821_p3 = por %p820_p2, %p819_p1 }
  0x8e   :  { %p822_p4 = pnand %p821_p3, %p815_p0 }
  0x90   :  { %825 = shalt.err (!%p822_p4)  }
  0x91   :  { %111 = dma.hbm_to_vmem [thread:$0]  %s98_s5, 16, %s1249_s17, [#allocation3 + $0x5] }
  0x92   :  { %s601_s11 = sshll.u32 %s1246_s18, 4  ;;  %s1277_s0 = sld [smem:[#allocation5 + $0x7]] }
  0x93   :  { %s115_s15 = scalar_lea.hbm %s1447_s1, %s601_s11 }
  0x94   :  { %s826_s16 = scalar_lea.hbm %s115_s15, 16  ;;  %p829_p6 = scmp.lt.u32.totalorder %s115_s15, %s1447_s1 }
  0x95   :  { %p827_p5 = scmp.ne.s32.totalorder %s115_s15, %s826_s16  ;;  %p830_p7 = scmp.lt.u32.totalorder %s1190_s8, %s826_s16 }
  0x96   :  { %p832_p9 = scmp.lt.u32.totalorder %s826_s16, %s115_s15 }
  0x97   :  { %p831_p8 = por %p830_p7, %p829_p6 }
  0x99   :  { %p833_p10 = por %p832_p9, %p831_p8 }
  0x9b   :  { %p834_p11 = pnand %p833_p10, %p827_p5 }
  0x9d   :  { %837 = shalt.err (!%p834_p11)  }
  0x9e   :  { %s838_s17 = scalar_lea.vmem %s1264_s27, 16  ;;  %p843_p13 = scmp.lt.s32.totalorder %s1264_s27, %s1173_s21 }
  0x9f   :  { %p839_p12 = scmp.ne.s32.totalorder %s1264_s27, %s838_s17  ;;  %p844_p0 = scmp.lt.s32.totalorder %s1199_s12, %s838_s17 }
  0xa1   :  { %p845_p1 = por %p844_p0, %p843_p13 }
  0xa3   :  { %p846_p2 = pnand %p845_p1, %p839_p12 }
  0xa5   :  { %849 = shalt.err (!%p846_p2)  }
  0xa6   :  { %128 = dma.hbm_to_vmem [thread:$0]  %s115_s15, 16, %s1264_s27, [#allocation3 + $0x6] }
  0xa7   :  { %s1132_s18 = smov [#allocation2 + $0x7]   ;;  %s1292_s23 = sld [smem:[#allocation5 + $0x8]] }
  0xa8   :  { %s142_s22 = sshll.u32 %s1132_s18, 4  ;;  %s1133_s25 = smov [#allocation2 + $0x8]   ;;  %s143_s22 = int_to_ptr.vmem [resolvable:$true] %s142_s22 }
  0xa9   :  { %s159_s26 = sshll.u32 %s1133_s25, 4  ;;  %s1294_s28 = sld [smem:[#allocation5 + $0x9]]  ;;  %s1297_s26 = int_to_ptr.vmem [resolvable:$true] %s159_s26 }
  0xaa   :  { %s603_s29 = sshll.u32 %s1277_s0, 4 }
  0xab   :  { %s132_s3 = scalar_lea.hbm %s1447_s1, %s603_s29 }
  0xac   :  { %s850_s4 = scalar_lea.hbm %s132_s3, 16  ;;  %p853_p4 = scmp.lt.u32.totalorder %s132_s3, %s1447_s1 }
  0xad   :  { %p851_p3 = scmp.ne.s32.totalorder %s132_s3, %s850_s4  ;;  %p854_p5 = scmp.lt.u32.totalorder %s1190_s8, %s850_s4 }
  0xae   :  { %p856_p7 = scmp.lt.u32.totalorder %s850_s4, %s132_s3 }
  0xaf   :  { %p855_p6 = por %p854_p5, %p853_p4 }
  0xb1   :  { %p857_p8 = por %p856_p7, %p855_p6 }
  0xb3   :  { %p858_p9 = pnand %p857_p8, %p851_p3 }
  0xb5   :  { %861 = shalt.err (!%p858_p9)  }
  0xb6   :  { %s862_s6 = scalar_lea.vmem %s143_s22, 16  ;;  %p867_p11 = scmp.lt.s32.totalorder %s143_s22, %s1173_s21 }
  0xb7   :  { %p863_p10 = scmp.ne.s32.totalorder %s143_s22, %s862_s6  ;;  %p868_p12 = scmp.lt.s32.totalorder %s1199_s12, %s862_s6 }
  0xb9   :  { %p869_p13 = por %p868_p12, %p867_p11 }
  0xbb   :  { %p870_p0 = pnand %p869_p13, %p863_p10 }
  0xbd   :  { %873 = shalt.err (!%p870_p0)  }
  0xbe   :  { %145 = dma.hbm_to_vmem [thread:$0]  %s132_s3, 16, %s143_s22, [#allocation3 + $0x7] }
  0xbf   :  { %s605_s7 = sshll.u32 %s1292_s23, 4  ;;  %s1134_s9 = smov [#allocation2 + $0x9]  }
  0xc0   :  { %s176_s10 = sshll.u32 %s1134_s9, 4  ;;  %s149_s13 = scalar_lea.hbm %s1447_s1, %s605_s7  ;;  %s1312_s10 = int_to_ptr.vmem [resolvable:$true] %s176_s10 }
  0xc1   :  { %s874_s14 = scalar_lea.hbm %s149_s13, 16  ;;  %p877_p2 = scmp.lt.u32.totalorder %s149_s13, %s1447_s1 }
  0xc2   :  { %p875_p1 = scmp.ne.s32.totalorder %s149_s13, %s874_s14  ;;  %p878_p3 = scmp.lt.u32.totalorder %s1190_s8, %s874_s14 }
  0xc3   :  { %p880_p5 = scmp.lt.u32.totalorder %s874_s14, %s149_s13 }
  0xc4   :  { %p879_p4 = por %p878_p3, %p877_p2 }
  0xc6   :  { %p881_p6 = por %p880_p5, %p879_p4 }
  0xc8   :  { %p882_p7 = pnand %p881_p6, %p875_p1 }
  0xca   :  { %885 = shalt.err (!%p882_p7)  }
  0xcb   :  { %s886_s19 = scalar_lea.vmem %s1297_s26, 16  ;;  %p891_p9 = scmp.lt.s32.totalorder %s1297_s26, %s1173_s21 }
  0xcc   :  { %p887_p8 = scmp.ne.s32.totalorder %s1297_s26, %s886_s19  ;;  %p892_p10 = scmp.lt.s32.totalorder %s1199_s12, %s886_s19 }
  0xce   :  { %p893_p11 = por %p892_p10, %p891_p9 }
  0xd0   :  { %p894_p12 = pnand %p893_p11, %p887_p8 }
  0xd2   :  { %897 = shalt.err (!%p894_p12)  }
  0xd3   :  { %162 = dma.hbm_to_vmem [thread:$0]  %s149_s13, 16, %s1297_s26, [#allocation3 + $0x8] }
  0xd4   :  { %s607_s20 = sshll.u32 %s1294_s28, 4  ;;  %s1325_s17 = sld [smem:[#allocation5 + $0xa]] }
  0xd5   :  { %s166_s23 = scalar_lea.hbm %s1447_s1, %s607_s20 }
  0xd6   :  { %s898_s25 = scalar_lea.hbm %s166_s23, 16  ;;  %p901_p0 = scmp.lt.u32.totalorder %s166_s23, %s1447_s1 }
  0xd7   :  { %p899_p13 = scmp.ne.s32.totalorder %s166_s23, %s898_s25  ;;  %p902_p1 = scmp.lt.u32.totalorder %s1190_s8, %s898_s25 }
  0xd8   :  { %p904_p3 = scmp.lt.u32.totalorder %s898_s25, %s166_s23 }
  0xd9   :  { %p903_p2 = por %p902_p1, %p901_p0 }
  0xdb   :  { %p905_p4 = por %p904_p3, %p903_p2 }
  0xdd   :  { %p906_p5 = pnand %p905_p4, %p899_p13 }
  0xdf   :  { %909 = shalt.err (!%p906_p5)  }
  0xe0   :  { %s910_s26 = scalar_lea.vmem %s1312_s10, 16  ;;  %p915_p7 = scmp.lt.s32.totalorder %s1312_s10, %s1173_s21 }
  0xe1   :  { %p911_p6 = scmp.ne.s32.totalorder %s1312_s10, %s910_s26  ;;  %p916_p8 = scmp.lt.s32.totalorder %s1199_s12, %s910_s26 }
  0xe3   :  { %p917_p9 = por %p916_p8, %p915_p7 }
  0xe5   :  { %p918_p10 = pnand %p917_p9, %p911_p6 }
  0xe7   :  { %921 = shalt.err (!%p918_p10)  }
  0xe8   :  { %179 = dma.hbm_to_vmem [thread:$0]  %s166_s23, 16, %s1312_s10, [#allocation3 + $0x9] }
  0xe9   :  { %s1135_s28 = smov [#allocation2 + $0xa]   ;;  %s1340_s3 = sld [smem:[#allocation5 + $0xb]] }
  0xea   :  { %s193_s24 = sshll.u32 %s1135_s28, 4  ;;  %s1136_s4 = smov [#allocation2 + $0xb]   ;;  %s194_s24 = int_to_ptr.vmem [resolvable:$true] %s193_s24 }
  0xeb   :  { %s210_s5 = sshll.u32 %s1136_s4, 4  ;;  %s1342_s27 = sld [smem:[#allocation5 + $0xc]]  ;;  %s1345_s5 = int_to_ptr.vmem [resolvable:$true] %s210_s5 }
  0xec   :  { %s609_s6 = sshll.u32 %s1325_s17, 4 }
  0xed   :  { %s183_s11 = scalar_lea.hbm %s1447_s1, %s609_s6 }
  0xee   :  { %s922_s0 = scalar_lea.hbm %s183_s11, 16  ;;  %p925_p12 = scmp.lt.u32.totalorder %s183_s11, %s1447_s1 }
  0xef   :  { %p923_p11 = scmp.ne.s32.totalorder %s183_s11, %s922_s0  ;;  %p926_p13 = scmp.lt.u32.totalorder %s1190_s8, %s922_s0 }
  0xf0   :  { %p928_p1 = scmp.lt.u32.totalorder %s922_s0, %s183_s11 }
  0xf1   :  { %p927_p0 = por %p926_p13, %p925_p12 }
  0xf3   :  { %p929_p2 = por %p928_p1, %p927_p0 }
  0xf5   :  { %p930_p3 = pnand %p929_p2, %p923_p11 }
  0xf7   :  { %933 = shalt.err (!%p930_p3)  }
  0xf8   :  { %s934_s14 = scalar_lea.vmem %s194_s24, 16  ;;  %p939_p5 = scmp.lt.s32.totalorder %s194_s24, %s1173_s21 }
  0xf9   :  { %p935_p4 = scmp.ne.s32.totalorder %s194_s24, %s934_s14  ;;  %p940_p6 = scmp.lt.s32.totalorder %s1199_s12, %s934_s14 }
  0xfb   :  { %p941_p7 = por %p940_p6, %p939_p5 }
  0xfd   :  { %p942_p8 = pnand %p941_p7, %p935_p4 }
  0xff   :  { %945 = shalt.err (!%p942_p8)  }
 0x100   :  { %196 = dma.hbm_to_vmem [thread:$0]  %s183_s11, 16, %s194_s24, [#allocation3 + $0xa] }
 0x101   :  { %s611_s15 = sshll.u32 %s1340_s3, 4  ;;  %s1137_s16 = smov [#allocation2 + $0xc]  }
 0x102   :  { %s227_s19 = sshll.u32 %s1137_s16, 4  ;;  %s200_s18 = scalar_lea.hbm %s1447_s1, %s611_s15  ;;  %s1360_s19 = int_to_ptr.vmem [resolvable:$true] %s227_s19 }
 0x103   :  { %s946_s22 = scalar_lea.hbm %s200_s18, 16  ;;  %p949_p10 = scmp.lt.u32.totalorder %s200_s18, %s1447_s1 }
 0x104   :  { %p947_p9 = scmp.ne.s32.totalorder %s200_s18, %s946_s22  ;;  %p950_p11 = scmp.lt.u32.totalorder %s1190_s8, %s946_s22 }
 0x105   :  { %p952_p13 = scmp.lt.u32.totalorder %s946_s22, %s200_s18 }
 0x106   :  { %p951_p12 = por %p950_p11, %p949_p10 }
 0x108   :  { %p953_p0 = por %p952_p13, %p951_p12 }
 0x10a   :  { %p954_p1 = pnand %p953_p0, %p947_p9 }
 0x10c   :  { %957 = shalt.err (!%p954_p1)  }
 0x10d   :  { %s958_s29 = scalar_lea.vmem %s1345_s5, 16  ;;  %p963_p3 = scmp.lt.s32.totalorder %s1345_s5, %s1173_s21 }
 0x10e   :  { %p959_p2 = scmp.ne.s32.totalorder %s1345_s5, %s958_s29  ;;  %p964_p4 = scmp.lt.s32.totalorder %s1199_s12, %s958_s29 }
 0x110   :  { %p965_p5 = por %p964_p4, %p963_p3 }
 0x112   :  { %p966_p6 = pnand %p965_p5, %p959_p2 }
 0x114   :  { %969 = shalt.err (!%p966_p6)  }
 0x115   :  { %213 = dma.hbm_to_vmem [thread:$0]  %s200_s18, 16, %s1345_s5, [#allocation3 + $0xb] }
 0x116   :  { %s613_s30 = sshll.u32 %s1342_s27, 4  ;;  %s1373_s26 = sld [smem:[#allocation5 + $0xd]] }
 0x117   :  { %s217_s3 = scalar_lea.hbm %s1447_s1, %s613_s30 }
 0x118   :  { %s970_s4 = scalar_lea.hbm %s217_s3, 16  ;;  %p973_p8 = scmp.lt.u32.totalorder %s217_s3, %s1447_s1 }
 0x119   :  { %p971_p7 = scmp.ne.s32.totalorder %s217_s3, %s970_s4  ;;  %p974_p9 = scmp.lt.u32.totalorder %s1190_s8, %s970_s4 }
 0x11a   :  { %p976_p11 = scmp.lt.u32.totalorder %s970_s4, %s217_s3 }
 0x11b   :  { %p975_p10 = por %p974_p9, %p973_p8 }
 0x11d   :  { %p977_p12 = por %p976_p11, %p975_p10 }
 0x11f   :  { %p978_p13 = pnand %p977_p12, %p971_p7 }
 0x121   :  { %981 = shalt.err (!%p978_p13)  }
 0x122   :  { %s982_s5 = scalar_lea.vmem %s1360_s19, 16  ;;  %p987_p1 = scmp.lt.s32.totalorder %s1360_s19, %s1173_s21 }
 0x123   :  { %p983_p0 = scmp.ne.s32.totalorder %s1360_s19, %s982_s5  ;;  %p988_p2 = scmp.lt.s32.totalorder %s1199_s12, %s982_s5 }
 0x125   :  { %p989_p3 = por %p988_p2, %p987_p1 }
 0x127   :  { %p990_p4 = pnand %p989_p3, %p983_p0 }
 0x129   :  { %993 = shalt.err (!%p990_p4)  }
 0x12a   :  { %230 = dma.hbm_to_vmem [thread:$0]  %s217_s3, 16, %s1360_s19, [#allocation3 + $0xc] }
 0x12b   :  { %s1138_s27 = smov [#allocation2 + $0xd]   ;;  %s1388_s11 = sld [smem:[#allocation5 + $0xe]] }
 0x12c   :  { %s244_s9 = sshll.u32 %s1138_s27, 4  ;;  %s1139_s0 = smov [#allocation2 + $0xe]   ;;  %s245_s9 = int_to_ptr.vmem [resolvable:$true] %s244_s9 }
 0x12d   :  { %s261_s13 = sshll.u32 %s1139_s0, 4  ;;  %s1390_s10 = sld [smem:[#allocation5 + $0xf]]  ;;  %s1393_s13 = int_to_ptr.vmem [resolvable:$true] %s261_s13 }
 0x12e   :  { %s615_s14 = sshll.u32 %s1373_s26, 4 }
 0x12f   :  { %s234_s20 = scalar_lea.hbm %s1447_s1, %s615_s14 }
 0x130   :  { %s994_s17 = scalar_lea.hbm %s234_s20, 16  ;;  %p997_p6 = scmp.lt.u32.totalorder %s234_s20, %s1447_s1 }
 0x131   :  { %p995_p5 = scmp.ne.s32.totalorder %s234_s20, %s994_s17  ;;  %p998_p7 = scmp.lt.u32.totalorder %s1190_s8, %s994_s17 }
 0x132   :  { %p1000_p9 = scmp.lt.u32.totalorder %s994_s17, %s234_s20 }
 0x133   :  { %p999_p8 = por %p998_p7, %p997_p6 }
 0x135   :  { %p1001_p10 = por %p1000_p9, %p999_p8 }
 0x137   :  { %p1002_p11 = pnand %p1001_p10, %p995_p5 }
 0x139   :  { %1005 = shalt.err (!%p1002_p11)  }
 0x13a   :  { %s1006_s22 = scalar_lea.vmem %s245_s9, 16  ;;  %p1011_p13 = scmp.lt.s32.totalorder %s245_s9, %s1173_s21 }
 0x13b   :  { %p1007_p12 = scmp.ne.s32.totalorder %s245_s9, %s1006_s22  ;;  %p1012_p0 = scmp.lt.s32.totalorder %s1199_s12, %s1006_s22 }
 0x13d   :  { %p1013_p1 = por %p1012_p0, %p1011_p13 }
 0x13f   :  { %p1014_p2 = pnand %p1013_p1, %p1007_p12 }
 0x141   :  { %1017 = shalt.err (!%p1014_p2)  }
 0x142   :  { %247 = dma.hbm_to_vmem [thread:$0]  %s234_s20, 16, %s245_s9, [#allocation3 + $0xd] }
 0x143   :  { %s617_s23 = sshll.u32 %s1388_s11, 4  ;;  %s1140_s25 = smov [#allocation2 + $0xf]  }
 0x144   :  { %s278_s29 = sshll.u32 %s1140_s25, 4  ;;  %s251_s28 = scalar_lea.hbm %s1447_s1, %s617_s23  ;;  %s1408_s29 = int_to_ptr.vmem [resolvable:$true] %s278_s29 }
 0x145   :  { %s1018_s24 = scalar_lea.hbm %s251_s28, 16  ;;  %p1021_p4 = scmp.lt.u32.totalorder %s251_s28, %s1447_s1 }
 0x146   :  { %p1019_p3 = scmp.ne.s32.totalorder %s251_s28, %s1018_s24  ;;  %p1022_p5 = scmp.lt.u32.totalorder %s1190_s8, %s1018_s24 }
 0x147   :  { %p1024_p7 = scmp.lt.u32.totalorder %s1018_s24, %s251_s28 }
 0x148   :  { %p1023_p6 = por %p1022_p5, %p1021_p4 }
 0x14a   :  { %p1025_p8 = por %p1024_p7, %p1023_p6 }
 0x14c   :  { %p1026_p9 = pnand %p1025_p8, %p1019_p3 }
 0x14e   :  { %1029 = shalt.err (!%p1026_p9)  }
 0x14f   :  { %s1030_s6 = scalar_lea.vmem %s1393_s13, 16  ;;  %p1035_p11 = scmp.lt.s32.totalorder %s1393_s13, %s1173_s21 }
 0x150   :  { %p1031_p10 = scmp.ne.s32.totalorder %s1393_s13, %s1030_s6  ;;  %p1036_p12 = scmp.lt.s32.totalorder %s1199_s12, %s1030_s6 }
 0x152   :  { %p1037_p13 = por %p1036_p12, %p1035_p11 }
 0x154   :  { %p1038_p0 = pnand %p1037_p13, %p1031_p10 }
 0x156   :  { %1041 = shalt.err (!%p1038_p0)  }
 0x157   :  { %264 = dma.hbm_to_vmem [thread:$0]  %s251_s28, 16, %s1393_s13, [#allocation3 + $0xe] }
 0x158   :  { %s619_s7 = sshll.u32 %s1390_s10, 4 }
 0x159   :  { %s268_s9 = scalar_lea.hbm %s1447_s1, %s619_s7 }
 0x15a   :  { %s1042_s11 = scalar_lea.hbm %s268_s9, 16  ;;  %p1045_p2 = scmp.lt.u32.totalorder %s268_s9, %s1447_s1 }
 0x15b   :  { %p1043_p1 = scmp.ne.s32.totalorder %s268_s9, %s1042_s11  ;;  %p1046_p3 = scmp.lt.u32.totalorder %s1190_s8, %s1042_s11 }
 0x15c   :  { %p1048_p5 = scmp.lt.u32.totalorder %s1042_s11, %s268_s9 }
 0x15d   :  { %p1047_p4 = por %p1046_p3, %p1045_p2 }
 0x15f   :  { %p1049_p6 = por %p1048_p5, %p1047_p4 }
 0x161   :  { %p1050_p7 = pnand %p1049_p6, %p1043_p1 }
 0x163   :  { %1053 = shalt.err (!%p1050_p7)  }
 0x164   :  { %s1054_s13 = scalar_lea.vmem %s1408_s29, 16  ;;  %p1059_p9 = scmp.lt.s32.totalorder %s1408_s29, %s1173_s21 }
 0x165   :  { %p1055_p8 = scmp.ne.s32.totalorder %s1408_s29, %s1054_s13  ;;  %p1060_p10 = scmp.lt.s32.totalorder %s1199_s12, %s1054_s13 }
 0x167   :  { %p1061_p11 = por %p1060_p10, %p1059_p9 }
 0x169   :  { %p1062_p12 = pnand %p1061_p11, %p1055_p8 }
 0x16b   :  { %1065 = shalt.err (!%p1062_p12)  }
 0x16c   :  { %281 = dma.hbm_to_vmem [thread:$0]  %s268_s9, 16, %s1408_s29, [#allocation3 + $0xf] }
 0x16d   :  { %1090 = dma.done.wait [#allocation3], 16 }
 0x16e   :  { %1091 = vsyncadd [#allocation3], 4294967280 }
 0x16f   :  { %1092 = dma.done.wait [#allocation3 + $0x1], 16 }
 0x170   :  { %1093 = vsyncadd [#allocation3 + $0x1], 4294967280 }
 0x171   :  { %1094 = dma.done.wait [#allocation3 + $0x2], 16 }
 0x172   :  { %1095 = vsyncadd [#allocation3 + $0x2], 4294967280 }
 0x173   :  { %1096 = dma.done.wait [#allocation3 + $0x3], 16 }
 0x174   :  { %1097 = vsyncadd [#allocation3 + $0x3], 4294967280 }
 0x175   :  { %1098 = dma.done.wait [#allocation3 + $0x4], 16 }
 0x176   :  { %1099 = vsyncadd [#allocation3 + $0x4], 4294967280 }
 0x177   :  { %1100 = dma.done.wait [#allocation3 + $0x5], 16 }
 0x178   :  { %1101 = vsyncadd [#allocation3 + $0x5], 4294967280 }
 0x179   :  { %1102 = dma.done.wait [#allocation3 + $0x6], 16 }
 0x17a   :  { %1103 = vsyncadd [#allocation3 + $0x6], 4294967280 }
 0x17b   :  { %1104 = dma.done.wait [#allocation3 + $0x7], 16 }
 0x17c   :  { %1105 = vsyncadd [#allocation3 + $0x7], 4294967280 }
 0x17d   :  { %1106 = dma.done.wait [#allocation3 + $0x8], 16 }
 0x17e   :  { %1107 = vsyncadd [#allocation3 + $0x8], 4294967280 }
 0x17f   :  { %1108 = dma.done.wait [#allocation3 + $0x9], 16 }
 0x180   :  { %1109 = vsyncadd [#allocation3 + $0x9], 4294967280 }
 0x181   :  { %1110 = dma.done.wait [#allocation3 + $0xa], 16 }
 0x182   :  { %1111 = vsyncadd [#allocation3 + $0xa], 4294967280 }
 0x183   :  { %1112 = dma.done.wait [#allocation3 + $0xb], 16 }
 0x184   :  { %1113 = vsyncadd [#allocation3 + $0xb], 4294967280 }
 0x185   :  { %1114 = dma.done.wait [#allocation3 + $0xc], 16 }
 0x186   :  { %1115 = vsyncadd [#allocation3 + $0xc], 4294967280 }
 0x187   :  { %1116 = dma.done.wait [#allocation3 + $0xd], 16 }
 0x188   :  { %1117 = vsyncadd [#allocation3 + $0xd], 4294967280 }
 0x189   :  { %1118 = dma.done.wait [#allocation3 + $0xe], 16 }
 0x18a   :  { %1119 = vsyncadd [#allocation3 + $0xe], 4294967280 }
 0x18b   :  { %1120 = dma.done.wait [#allocation3 + $0xf], 16 }
 0x18c   :  { %1121 = vsyncadd [#allocation3 + $0xf], 4294967280  ;;  %s1141_s1 = smov [#allocation6]   ;;  %v314_v0 = vld [vmem:[#allocation2] sm:$0xff]  ;;  %v315_v1 = vld [vmem:[#allocation2 + $0x8] sm:$0xff] }
 0x18d   :  { %s323_s21 = sshll.u32 %s1141_s1, 4  ;;  %316 = vst [vmem:[#allocation6] sm:$0xff] %v314_v0  ;;  %317 = vst [vmem:[#allocation6 + $0x8] sm:$0xff] %v315_v1  ;;  %s324_s21 = int_to_ptr.vmem [resolvable:$true] %s323_s21 }
 0x18e   :  { %s1066_s8 = scalar_lea.vmem %s324_s21, 256  ;;  %p1071_p0 = scmp.lt.s32.totalorder %s324_s21, %s324_s21 }
 0x18f   :  { %p1067_p13 = scmp.ne.s32.totalorder %s324_s21, %s1066_s8  ;;  %p1072_p1 = scmp.lt.s32.totalorder %s1066_s8, %s1066_s8 }
 0x191   :  { %p1073_p2 = por %p1072_p1, %p1071_p0 }
 0x193   :  { %p1074_p3 = pnand %p1073_p2, %p1067_p13 }
 0x195   :  { %1077 = shalt.err (!%p1074_p3)
}
 0x196   :  { %s1078_s15 = scalar_lea.hbm %s1448_s2, 256 }
 0x197   :  { %p1079_p4 = scmp.ne.s32.totalorder %s1448_s2, %s1078_s15  ;;  %p1082_p5 = scmp.lt.u32.totalorder %s1078_s15, %s1448_s2 }
 0x199   :  { %p1084_p6 = pnand %p1082_p5, %p1079_p4 }
 0x19b   :  { %1087 = shalt.err (!%p1084_p6)
}
 0x19c   :  { %s1142_s19 = smov 128   ;;  %s1143_s22 = smov 8  }
 0x19d   :  { %329 = dma.vmem_to_hbm [thread:$0]  %s324_s21, 256, %s1448_s2, [#allocation7], %s1142_s19, %s1142_s19, %s1143_s22  }
 0x19e   :  { %1122 = dma.done.wait [#allocation7], 256  }
 0x19f   :  { %1123 = vsyncadd [#allocation7], 4294967040 }
 0x1a0   :  { %333 = vsyncpa [#allocation7], 1 }
 0x1a1   :  { %334 = vsyncmov [#allocation3] }
 0x1a4   :  { %s335_s29 = vpop.sfrf %334 }
 0x1a5   :  { %p620_p7 = scmp.ne.s32.totalorder %s335_s29, 0 }
 0x1a7   :  { %339 = shalt.err (%p620_p7)  }
 0x1a8   :  { %341 = vsyncmov [#allocation3 + $0x1] }
 0x1ab   :  { %s342_s30 = vpop.sfrf %341 }
 0x1ac   :  { %p621_p8 = scmp.ne.s32.totalorder %s342_s30, 0 }
 0x1ae   :  { %346 = shalt.err (%p621_p8)  }
 0x1af   :  { %348 = vsyncmov [#allocation3 + $0x2] }
 0x1b2   :  { %s349_s26 = vpop.sfrf %348 }
 0x1b3   :  { %p622_p9 = scmp.ne.s32.totalorder %s349_s26, 0 }
 0x1b5   :  { %353 = shalt.err (%p622_p9)  }
 0x1b6   :  { %355 = vsyncmov [#allocation3 + $0x3] }
 0x1b9   :  { %s356_s28 = vpop.sfrf %355 }
 0x1ba   :  { %p623_p10 = scmp.ne.s32.totalorder %s356_s28, 0 }
 0x1bc   :  { %360 = shalt.err (%p623_p10)  }
 0x1bd   :  { %362 = vsyncmov [#allocation3 + $0x4] }
 0x1c0   :  { %s363_s2 = vpop.sfrf %362 }
 0x1c1   :  { %p624_p11 = scmp.ne.s32.totalorder %s363_s2, 0 }
 0x1c3   :  { %367 = shalt.err (%p624_p11)  }
 0x1c4   :  { %369 = vsyncmov [#allocation3 + $0x5] }
 0x1c7   :  { %s370_s24 = vpop.sfrf %369 }
 0x1c8   :  { %p625_p12 = scmp.ne.s32.totalorder %s370_s24, 0 }
 0x1ca   :  { %374 = shalt.err (%p625_p12)  }
 0x1cb   :  { %376 = vsyncmov [#allocation3 + $0x6] }
 0x1ce   :  { %s377_s3 = vpop.sfrf %376 }
 0x1cf   :  { %p626_p13 = scmp.ne.s32.totalorder %s377_s3, 0 }
 0x1d1   :  { %381 = shalt.err (%p626_p13)  }
 0x1d2   :  { %383 = vsyncmov [#allocation3 + $0x7] }
 0x1d5   :  { %s384_s4 = vpop.sfrf %383 }
 0x1d6   :  { %p627_p0 = scmp.ne.s32.totalorder %s384_s4, 0 }
 0x1d8   :  { %388 = shalt.err (%p627_p0)  }
 0x1d9   :  { %390 = vsyncmov [#allocation3 + $0x8] }
 0x1dc   :  { %s391_s6 = vpop.sfrf %390 }
 0x1dd   :  { %p628_p1 = scmp.ne.s32.totalorder %s391_s6, 0 }
 0x1df   :  { %395 = shalt.err (%p628_p1)  }
 0x1e0   :  { %397 = vsyncmov [#allocation3 + $0x9] }
 0x1e3   :  { %s398_s7 = vpop.sfrf %397 }
 0x1e4   :  { %p629_p2 = scmp.ne.s32.totalorder %s398_s7, 0 }
 0x1e6   :  { %402 = shalt.err (%p629_p2)  }
 0x1e7   :  { %404 = vsyncmov [#allocation3 + $0xa] }
 0x1ea   :  { %s405_s5 = vpop.sfrf %404 }
 0x1eb   :  { %p630_p3 = scmp.ne.s32.totalorder %s405_s5, 0 }
 0x1ed   :  { %409 = shalt.err (%p630_p3)  }
 0x1ee   :  { %411 = vsyncmov [#allocation3 + $0xb] }
 0x1f1   :  { %s412_s27 = vpop.sfrf %411 }
 0x1f2   :  { %p631_p4 = scmp.ne.s32.totalorder %s412_s27, 0 }
 0x1f4   :  { %416 = shalt.err (%p631_p4)  }
 0x1f5   :  { %418 = vsyncmov [#allocation3 + $0xc] }
 0x1f8   :  { %s419_s9 = vpop.sfrf %418 }
 0x1f9   :  { %p632_p5 = scmp.ne.s32.totalorder %s419_s9, 0 }
 0x1fb   :  { %423 = shalt.err (%p632_p5)  }
 0x1fc   :  { %425 = vsyncmov [#allocation3 + $0xd] }
 0x1ff   :  { %s426_s11 = vpop.sfrf %425 }
 0x200   :  { %p633_p6 = scmp.ne.s32.totalorder %s426_s11, 0 }
 0x202   :  { %430 = shalt.err (%p633_p6)  }
 0x203   :  { %432 = vsyncmov [#allocation3 + $0xe] }
 0x206   :  { %s433_s0 = vpop.sfrf %432 }
 0x207   :  { %p634_p7 = scmp.ne.s32.totalorder %s433_s0, 0 }
 0x209   :  { %437 = shalt.err (%p634_p7)  }
 0x20a   :  { %439 = vsyncmov [#allocation3 + $0xf] }
 0x20d   :  { %s440_s14 = vpop.sfrf %439 }
 0x20e   :  { %p635_p8 = scmp.ne.s32.totalorder %s440_s14, 0 }
 0x210   :  { %444 = shalt.err (%p635_p8)  }
 0x211   :  { %446 = vsyncmov [#allocation3 + $0x10] }
 0x214   :  { %s447_s13 = vpop.sfrf %446 }
 0x215   :  { %p636_p9 = scmp.ne.s32.totalorder %s447_s13, 0 }
 0x217   :  { %451 = shalt.err (%p636_p9)  }
 0x218   :  { %453 = vsyncmov [#allocation3 + $0x11] }
 0x21b   :  { %s454_s1 = vpop.sfrf %453 }
 0x21c   :  { %p637_p10 = scmp.ne.s32.totalorder %s454_s1, 0 }
 0x21e   :  { %458 = shalt.err (%p637_p10)  }
 0x21f   :  { %460 = vsyncmov [#allocation3 + $0x12] }
 0x222   :  { %s461_s21 = vpop.sfrf %460 }
 0x223   :  { %p638_p11 = scmp.ne.s32.totalorder %s461_s21, 0 }
 0x225   :  { %465 = shalt.err (%p638_p11)  }
 0x226   :  { %467 = vsyncmov [#allocation3 + $0x13] }
 0x229   :  { %s468_s8 = vpop.sfrf %467 }
 0x22a   :  { %p639_p12 = scmp.ne.s32.totalorder %s468_s8, 0 }
 0x22c   :  { %472 = shalt.err (%p639_p12)  }
 0x22d   :  { %474 = vsyncmov [#allocation3 + $0x14] }
 0x230   :  { %s475_s12 = vpop.sfrf %474 }
 0x231   :  { %p640_p13 = scmp.ne.s32.totalorder %s475_s12, 0 }
 0x233   :  { %479 = shalt.err (%p640_p13)  }
 0x234   :  { %481 = vsyncmov [#allocation3 + $0x15] }
 0x237   :  { %s482_s10 = vpop.sfrf %481 }
 0x238   :  { %p641_p0 = scmp.ne.s32.totalorder %s482_s10, 0 }
 0x23a   :  { %486 = shalt.err (%p641_p0)  }
 0x23b   :  { %488 = vsyncmov [#allocation3 + $0x16] }
 0x23e   :  { %s489_s15 = vpop.sfrf %488 }
 0x23f   :  { %p642_p1 = scmp.ne.s32.totalorder %s489_s15, 0 }
 0x241   :  { %493 = shalt.err (%p642_p1)  }
 0x242   :  { %495 = vsyncmov [#allocation3 + $0x17] }
 0x245   :  { %s496_s16 = vpop.sfrf %495 }
 0x246   :  { %p643_p2 = scmp.ne.s32.totalorder %s496_s16, 0 }
 0x248   :  { %500 = shalt.err (%p643_p2)  }
 0x249   :  { %502 = vsyncmov [#allocation3 + $0x18] }
 0x24c   :  { %s503_s20 = vpop.sfrf %502 }
 0x24d   :  { %p644_p3 = scmp.ne.s32.totalorder %s503_s20, 0 }
 0x24f   :  { %507 = shalt.err (%p644_p3)  }
 0x250   :  { %509 = vsyncmov [#allocation3 + $0x19] }
 0x253   :  { %s510_s17 = vpop.sfrf %509 }
 0x254   :  { %p645_p4 = scmp.ne.s32.totalorder %s510_s17, 0 }
 0x256   :  { %514 = shalt.err (%p645_p4)  }
 0x257   :  { %516 = vsyncmov [#allocation3 + $0x1a] }
 0x25a   :  { %s517_s18 = vpop.sfrf %516 }
 0x25b   :  { %p646_p5 = scmp.ne.s32.totalorder %s517_s18, 0 }
 0x25d   :  { %521 = shalt.err (%p646_p5)  }
 0x25e   :  { %523 = vsyncmov [#allocation3 + $0x1b] }
 0x261   :  { %s524_s19 = vpop.sfrf %523 }
 0x262   :  { %p647_p6 = scmp.ne.s32.totalorder %s524_s19, 0 }
 0x264   :  { %528 = shalt.err (%p647_p6)  }
 0x265   :  { %530 = vsyncmov [#allocation3 + $0x1c] }
 0x268   :  { %s531_s22 = vpop.sfrf %530 }
 0x269   :  { %p648_p7 = scmp.ne.s32.totalorder %s531_s22, 0 }
 0x26b   :  { %535 = shalt.err (%p648_p7)  }
 0x26c   :  { %537 = vsyncmov [#allocation3 + $0x1d] }
 0x26f   :  { %s538_s23 = vpop.sfrf %537 }
 0x270   :  { %p649_p8 = scmp.ne.s32.totalorder %s538_s23, 0 }
 0x272   :  { %542 = shalt.err (%p649_p8)  }
 0x273   :  { %544 = vsyncmov [#allocation3 + $0x1e] }
 0x276   :  { %s545_s25 = vpop.sfrf %544 }
 0x277   :  { %p650_p9 = scmp.ne.s32.totalorder %s545_s25, 0 }
 0x279   :  { %549 = shalt.err (%p650_p9)  }
 0x27a   :  { %551 = vsyncmov [#allocation3 + $0x1f] }
 0x27d   :  { %s552_s29 = vpop.sfrf %551 }
 0x27e   :  { %p651_p10 = scmp.ne.s32.totalorder %s552_s29, 0 }
 0x280   :  { %556 = shalt.err (%p651_p10)  }

</bundles_post_ra>
